<compile_context>
chip_gen: v7x
topology: tpu7x:2x2x1
jax: 0.10.0
libtpu: 0.0.40
codegen_flags: <defaults>
</compile_context>

<pallas_src>
from functools import partial

import numpy as np
import jax
import jax.numpy as jnp
from jax.experimental import pallas as pl
from jax.experimental.pallas import tpu as pltpu

# ----------------------------- configuration --------------------------------
IMG_SIZE = (32, 32)
PATCH_SIZE = (8, 8)
IN_CHANNELS = 2
OUT_CHANNELS = 2
EMBED_DIM = 64
DEPTH = 2
MLP_RATIO = 2.0
NUM_BLOCKS = 4
SPARSITY_THRESHOLD = 0.01
HARD_THRESHOLDING_FRACTION = 1.0
HIDDEN_SIZE_FACTOR = 1
LN_EPS = 1e-6


# ------------------------------ math helpers --------------------------------
def _erf_approx(x):
    # Abramowitz & Stegun 7.1.26 (max abs err ~1.5e-7, f32 rounding level);
    # used for the exact (erf-based) torch.nn.GELU().
    a1, a2, a3, a4, a5 = 0.254829592, -0.284496736, 1.421413741, -1.453152027, 1.061405429
    p = 0.3275911
    s = jnp.where(x >= 0.0, 1.0, -1.0)
    ax = jnp.abs(x)
    t = 1.0 / (1.0 + p * ax)
    poly = ((((a5 * t + a4) * t + a3) * t + a2) * t + a1) * t
    return s * (1.0 - poly * jnp.exp(-ax * ax))


def _gelu(x):
    return 0.5 * x * (1.0 + _erf_approx(x * 0.7071067811865476))


def _softshrink(x, lambd):
    return jnp.where(x > lambd, x - lambd, jnp.where(x < -lambd, x + lambd, 0.0))


def _layernorm(x, gamma, beta, eps):
    mean = jnp.mean(x, axis=-1, keepdims=True)
    xc = x - mean
    var = jnp.mean(xc * xc, axis=-1, keepdims=True)
    return xc * jax.lax.rsqrt(var + eps) * gamma + beta


# ------------------------------ fused kernel --------------------------------
def _afnonet_fused_kernel(patches_ref, projw_ref, posb_ref,
                          dr_ref, di_ref, ir_ref, ii_ref,
                          ln1g_ref, ln1b_ref,
                          w1t_ref, w1b_ref, b1_ref,
                          w2r_ref, w2i_ref, b2r_ref, b2i_ref,
                          ln2g_ref, ln2b_ref,
                          fc1w_ref, fc1b_ref, fc2w_ref, fc2b_ref,
                          headw_ref, o_ref, *, depth, eps, lambd):
    dot = lambda a, b: jnp.dot(a, b, preferred_element_type=jnp.float32)

    # ---- patch embed (conv bias + pos_embed already folded into posb) ----
    x = dot(patches_ref[...], projw_ref[...]) + posb_ref[...]      # (bb*HW, C)

    dr = dr_ref[...]
    di = di_ref[...]
    ir = ir_ref[...]
    ii = ii_ref[...]

    for d in range(depth):                     # DEPTH small -> unrolled
        # ------------------ norm1 + AFNO2D spectral filter ------------------
        xn = _layernorm(x, ln1g_ref[d], ln1b_ref[d], eps)
        zr = dot(dr, xn)                       # (bb*Mfp, C) real rDFT coeffs
        zi = dot(di, xn)                       # (bb*Mfp, C) imag rDFT coeffs
        # block-diagonal complex MLP in lane-aligned 2x2 real form
        # (no lane concat / no lane-offset slicing)
        h1 = jnp.maximum(dot(zr, w1t_ref[d]) + dot(zi, w1b_ref[d]) + b1_ref[d],
                         0.0)                  # (bb*Mfp, 2C)  [o1_real | o1_imag]
        o2r = _softshrink(dot(h1, w2r_ref[d]) + b2r_ref[d], lambd)
        o2i = _softshrink(dot(h1, w2i_ref[d]) + b2i_ref[d], lambd)
        # NOTE: the zero-padded DFT mode rows (Mf..Mfp per batch block) pick up
        # bias/relu/softshrink values above, but the matching iDFT columns are
        # identically zero, so they contribute nothing to the inverse.
        spat = dot(ir, o2r) + dot(ii, o2i)     # inverse rDFT back to tokens
        # AFNO residual (bias = normalized input) + double-skip (pre-norm x)
        x = spat + xn + x

        # ------------------------ norm2 + MLP + skip ------------------------
        yn = _layernorm(x, ln2g_ref[d], ln2b_ref[d], eps)
        h = _gelu(dot(yn, fc1w_ref[d]) + fc1b_ref[d])
        x = dot(h, fc2w_ref[d]) + fc2b_ref[d] + x

    # ------------------------------- head --------------------------------
    o_ref[...] = dot(x, headw_ref[...]).astype(o_ref.dtype)


def afnonet_fused_pallas(patches, prep, n_steps, rows_per_step):
    M, K = patches.shape
    n_out = prep["head_w"].shape[1]
    depth = prep["ln1_g"].shape[0]

    def full_spec(arr):
        nd = arr.ndim
        return pl.BlockSpec(arr.shape, lambda i, nd=nd: (0,) * nd)

    dr, di, ir, ii = prep["dft"]
    weight_ops = [prep["proj_w_mat"], prep["posb"],
                  dr, di, ir, ii,
                  prep["ln1_g"], prep["ln1_b"],
                  prep["w1_top"], prep["w1_bot"], prep["b1"],
                  prep["w2_rcol"], prep["w2_icol"], prep["b2r"], prep["b2i"],
                  prep["ln2_g"], prep["ln2_b"],
                  prep["fc1_w"], prep["fc1_b"], prep["fc2_w"], prep["fc2_b"],
                  prep["head_w"]]

    in_specs = ([pl.BlockSpec((rows_per_step, K), lambda i: (i, 0))]
                + [full_spec(a) for a in weight_ops])

    return pl.pallas_call(
        partial(_afnonet_fused_kernel, depth=depth, eps=LN_EPS,
                lambd=SPARSITY_THRESHOLD),
        out_shape=jax.ShapeDtypeStruct((M, n_out), jnp.float32),
        grid=(n_steps,),
        in_specs=in_specs,
        out_specs=pl.BlockSpec((rows_per_step, n_out), lambda i: (i, 0)),
        compiler_params=pltpu.CompilerParams(
            dimension_semantics=("parallel",)),
    )(patches, *weight_ops)


# --------------------------- operator / weight packing -----------------------
def _build_dft_operators(H, W, bb):
    """Exact (ortho) 2D rDFT / irDFT over the H*W token grid as real matrices,
    replicated batch-block-diagonally for bb batch elements per grid step.

    Forward:  [real; imag] mode coeffs = Dr/Di @ x_flat,  Dr/Di: (bb*Mfp, bb*HW)
    Inverse:  x_flat = Ir @ real + Ii @ imag,              Ir/Ii: (bb*HW, bb*Mfp)
    Built by probing np.fft (same convention as torch.fft); each batch block's
    modes are padded Mf -> Mfp (multiple of 8) with ZERO rows/cols, so padded
    modes contribute nothing to the inverse transform.
    """
    Wf = W // 2 + 1
    HW = H * W
    Mf = H * Wf
    Mfp = ((Mf + 7) // 8) * 8
    Dr = np.zeros((Mfp, HW), np.float64)
    Di = np.zeros((Mfp, HW), np.float64)
    for j in range(HW):
        e = np.zeros((H, W))
        e.flat[j] = 1.0
        F = np.fft.rfft2(e, norm="ortho")
        Dr[:Mf, j] = F.real.ravel()
        Di[:Mf, j] = F.imag.ravel()
    Ir = np.zeros((HW, Mfp), np.float64)
    Ii = np.zeros((HW, Mfp), np.float64)
    for m in range(Mf):
        er = np.zeros((H, Wf), np.complex128)
        er.flat[m] = 1.0
        Ir[:, m] = np.fft.irfft2(er, s=(H, W), norm="ortho").ravel()
        ei = np.zeros((H, Wf), np.complex128)
        ei.flat[m] = 1.0j
        Ii[:, m] = np.fft.irfft2(ei, s=(H, W), norm="ortho").ravel()
    if bb > 1:
        eye = np.eye(bb)
        Dr, Di, Ir, Ii = (np.kron(eye, Dr), np.kron(eye, Di),
                          np.kron(eye, Ir), np.kron(eye, Ii))
    cvt = lambda a: jnp.asarray(a, jnp.float32)
    return cvt(Dr), cvt(Di), cvt(Ir), cvt(Ii)


def _block_diag(blocks):
    r, c = blocks[0].shape
    nb = len(blocks)
    out = jnp.zeros((nb * r, nb * c), blocks[0].dtype)
    for k, blk in enumerate(blocks):
        out = out.at[k * r:(k + 1) * r, k * c:(k + 1) * c].set(blk)
    return out


def _pack_afno(w1, b1, w2, b2):
    """Fold the block-diagonal complex weights into lane-aligned real matrices.

    With zr/zi the real/imag mode coeffs (T, C):
      h1  = relu(zr @ W1_top + zi @ W1_bot + b1big)   -> [o1_real | o1_imag]
      o2r = h1 @ W2_rcol + b2r ,  o2i = h1 @ W2_icol + b2i
    No lane concat of zr||zi and no lane-offset slicing of the output needed.
    """
    nb = w1.shape[1]
    W1r = _block_diag([w1[0, k] for k in range(nb)])
    W1i = _block_diag([w1[1, k] for k in range(nb)])
    W2r = _block_diag([w2[0, k] for k in range(nb)])
    W2i = _block_diag([w2[1, k] for k in range(nb)])
    w1_top = jnp.concatenate([W1r, W1i], axis=1)        # (C, 2C)
    w1_bot = jnp.concatenate([-W1i, W1r], axis=1)       # (C, 2C)
    b1big = jnp.concatenate([b1[0].reshape(-1), b1[1].reshape(-1)]).reshape(1, -1)
    w2_rcol = jnp.concatenate([W2r, -W2i], axis=0)      # (2C, C)
    w2_icol = jnp.concatenate([W2i, W2r], axis=0)       # (2C, C)
    b2r = b2[0].reshape(1, -1)
    b2i = b2[1].reshape(1, -1)
    return w1_top, w1_bot, b1big, w2_rcol, w2_icol, b2r, b2i


def prepare_params(raw, batch):
    """One-time (eager) repacking of PyTorch-style parameters for the kernel."""
    if HARD_THRESHOLDING_FRACTION != 1.0:
        raise NotImplementedError(
            "hard_thresholding_fraction < 1 needs the kept-mode mask folded in")
    p0, p1 = PATCH_SIZE
    h, w = IMG_SIZE[0] // p0, IMG_SIZE[1] // p1
    HW = h * w
    C = EMBED_DIM

    # 2-way parallel grid (keeps both v7x TCs busy); bb batches per grid step.
    n_steps = 2 if (batch >= 2 and batch % 2 == 0) else 1
    bb = batch // n_steps

    blocks = raw["blocks"]
    packed = [_pack_afno(b["afno"]["w1"], b["afno"]["b1"],
                         b["afno"]["w2"], b["afno"]["b2"]) for b in blocks]
    stk = lambda xs: jnp.stack(xs, axis=0)

    # conv bias folded into (batch-block-tiled) positional embedding
    posb = jnp.tile(raw["pos_embed"].reshape(HW, C) + raw["proj_b"].reshape(1, C),
                    (bb, 1))

    return {
        "proj_w_mat": raw["proj_w"].reshape(C, IN_CHANNELS * p0 * p1).T,
        "posb": posb,
        "head_w": raw["head_w"],
        "dft": _build_dft_operators(h, w, bb),
        "ln1_g": stk([b["norm1_w"].reshape(1, C) for b in blocks]),
        "ln1_b": stk([b["norm1_b"].reshape(1, C) for b in blocks]),
        "ln2_g": stk([b["norm2_w"].reshape(1, C) for b in blocks]),
        "ln2_b": stk([b["norm2_b"].reshape(1, C) for b in blocks]),
        "w1_top": stk([p[0] for p in packed]),
        "w1_bot": stk([p[1] for p in packed]),
        "b1": stk([p[2] for p in packed]),
        "w2_rcol": stk([p[3] for p in packed]),
        "w2_icol": stk([p[4] for p in packed]),
        "b2r": stk([p[5] for p in packed]),
        "b2i": stk([p[6] for p in packed]),
        "fc1_w": stk([b["fc1_w"] for b in blocks]),
        "fc1_b": stk([b["fc1_b"].reshape(1, -1) for b in blocks]),
        "fc2_w": stk([b["fc2_w"] for b in blocks]),
        "fc2_b": stk([b["fc2_b"].reshape(1, -1) for b in blocks]),
    }


# --------------------------------- forward -----------------------------------
def afnonet_forward(params, x):
    B = x.shape[0]
    p0, p1 = PATCH_SIZE
    H_img, W_img = IMG_SIZE
    h, w = H_img // p0, W_img // p1
    HW = h * w

    # NCHW -> patch matrix (pure layout glue, left to XLA)
    patches = (x.reshape(B, IN_CHANNELS, h, p0, w, p1)
                 .transpose(0, 2, 4, 1, 3, 5)
                 .reshape(B * HW, IN_CHANNELS * p0 * p1))

    rows_per_step = params["posb"].shape[0]          # bb * HW (static)
    assert (B * HW) % rows_per_step == 0, "params prepared for a different batch"
    n_steps = (B * HW) // rows_per_step

    y = afnonet_fused_pallas(patches, params, n_steps, rows_per_step)

    y = y.reshape(B, h, w, p0, p1, OUT_CHANNELS)
    y = jnp.transpose(y, (0, 5, 1, 3, 2, 4))
    return y.reshape(B, OUT_CHANNELS, H_img, W_img)


# ------------------------------ parameter init --------------------------------
def trunc_normal(key, shape, std=0.02):
    return std * jax.random.truncated_normal(key, -2.0, 2.0, shape, jnp.float32)


def init_params(key):
    p0, p1 = PATCH_SIZE
    h, w = IMG_SIZE[0] // p0, IMG_SIZE[1] // p1
    num_patches = h * w
    C = EMBED_DIM
    nb = NUM_BLOCKS
    bs = C // nb
    bsf = bs * HIDDEN_SIZE_FACTOR
    hidden = int(C * MLP_RATIO)
    scale = 0.02

    keys = iter(jax.random.split(key, 8 + DEPTH * 12))
    nk = lambda: next(keys)

    params = {
        "proj_w": trunc_normal(nk(), (C, IN_CHANNELS, p0, p1)),
        "proj_b": jnp.zeros((C,), jnp.float32),
        "pos_embed": trunc_normal(nk(), (1, num_patches, C)),
        "head_w": trunc_normal(nk(), (C, OUT_CHANNELS * p0 * p1)),
        "blocks": [],
    }
    for _ in range(DEPTH):
        blk = {
            "norm1_w": jnp.ones((C,), jnp.float32),
            "norm1_b": jnp.zeros((C,), jnp.float32),
            "norm2_w": jnp.ones((C,), jnp.float32),
            "norm2_b": jnp.zeros((C,), jnp.float32),
            "afno": {
                "w1": scale * jax.random.normal(nk(), (2, nb, bs, bsf), jnp.float32),
                "b1": scale * jax.random.normal(nk(), (2, nb, bsf), jnp.float32),
                "w2": scale * jax.random.normal(nk(), (2, nb, bsf, bs), jnp.float32),
                "b2": scale * jax.random.normal(nk(), (2, nb, bs), jnp.float32),
            },
            "fc1_w": trunc_normal(nk(), (C, hidden)),
            "fc1_b": jnp.zeros((hidden,), jnp.float32),
            "fc2_w": trunc_normal(nk(), (hidden, C)),
            "fc2_b": jnp.zeros((C,), jnp.float32),
        }
        params["blocks"].append(blk)
    return params


# ----------------------------------- main -------------------------------------
if __name__ == "__main__":
    key = jax.random.PRNGKey(0)
    pkey, xkey = jax.random.split(key)
    B = 2
    raw_params = init_params(pkey)
    params = prepare_params(raw_params, B)       # one-time repack (outside jit)
    x = jax.random.normal(xkey, (B, IN_CHANNELS, IMG_SIZE[0], IMG_SIZE[1]),
                          jnp.float32)

    fwd = jax.jit(afnonet_forward)
    out = fwd(params, x)
    jax.block_until_ready(out)

    assert out.shape == (B, OUT_CHANNELS, IMG_SIZE[0], IMG_SIZE[1]), out.shape
    assert out.dtype == jnp.float32
    assert bool(jnp.all(jnp.isfinite(out)))
    print("KERNEL_OK")
</pallas_src>

<mosaic_0001>
module attributes {stable_mosaic.version = 11 : i64} {
  func.func @_afnonet_fused_kernel(%arg0: i32, %arg1: memref<16x128xf32, #tpu.memory_space<vmem>>, %arg2: memref<128x64xf32, #tpu.memory_space<vmem>>, %arg3: memref<16x64xf32, #tpu.memory_space<vmem>>, %arg4: memref<16x16xf32, #tpu.memory_space<vmem>>, %arg5: memref<16x16xf32, #tpu.memory_space<vmem>>, %arg6: memref<16x16xf32, #tpu.memory_space<vmem>>, %arg7: memref<16x16xf32, #tpu.memory_space<vmem>>, %arg8: memref<2x1x64xf32, #tpu.memory_space<vmem>>, %arg9: memref<2x1x64xf32, #tpu.memory_space<vmem>>, %arg10: memref<2x64x128xf32, #tpu.memory_space<vmem>>, %arg11: memref<2x64x128xf32, #tpu.memory_space<vmem>>, %arg12: memref<2x1x128xf32, #tpu.memory_space<vmem>>, %arg13: memref<2x128x64xf32, #tpu.memory_space<vmem>>, %arg14: memref<2x128x64xf32, #tpu.memory_space<vmem>>, %arg15: memref<2x1x64xf32, #tpu.memory_space<vmem>>, %arg16: memref<2x1x64xf32, #tpu.memory_space<vmem>>, %arg17: memref<2x1x64xf32, #tpu.memory_space<vmem>>, %arg18: memref<2x1x64xf32, #tpu.memory_space<vmem>>, %arg19: memref<2x64x128xf32, #tpu.memory_space<vmem>>, %arg20: memref<2x1x128xf32, #tpu.memory_space<vmem>>, %arg21: memref<2x128x64xf32, #tpu.memory_space<vmem>>, %arg22: memref<2x1x64xf32, #tpu.memory_space<vmem>>, %arg23: memref<64x128xf32, #tpu.memory_space<vmem>>, %arg24: memref<16x128xf32, #tpu.memory_space<vmem>>) attributes {dimension_semantics = [#tpu.dimension_semantics<parallel>], iteration_bounds = array<i64: 2>, scalar_prefetch = 0 : i64, scratch_operands = 0 : i64, tpu.core_type = #tpu.core_type<tc>, window_params = [{transform_indices = @transform_0, window_bounds = array<i64: 16, 128>}, {pipeline_mode = #tpu.pipeline_mode<synchronous>, transform_indices = @transform_1, window_bounds = array<i64: 128, 64>}, {pipeline_mode = #tpu.pipeline_mode<synchronous>, transform_indices = @transform_2, window_bounds = array<i64: 16, 64>}, {pipeline_mode = #tpu.pipeline_mode<synchronous>, transform_indices = @transform_3, window_bounds = array<i64: 16, 16>}, {pipeline_mode = #tpu.pipeline_mode<synchronous>, transform_indices = @transform_4, window_bounds = array<i64: 16, 16>}, {pipeline_mode = #tpu.pipeline_mode<synchronous>, transform_indices = @transform_5, window_bounds = array<i64: 16, 16>}, {pipeline_mode = #tpu.pipeline_mode<synchronous>, transform_indices = @transform_6, window_bounds = array<i64: 16, 16>}, {pipeline_mode = #tpu.pipeline_mode<synchronous>, transform_indices = @transform_7, window_bounds = array<i64: 2, 1, 64>}, {pipeline_mode = #tpu.pipeline_mode<synchronous>, transform_indices = @transform_8, window_bounds = array<i64: 2, 1, 64>}, {pipeline_mode = #tpu.pipeline_mode<synchronous>, transform_indices = @transform_9, window_bounds = array<i64: 2, 64, 128>}, {pipeline_mode = #tpu.pipeline_mode<synchronous>, transform_indices = @transform_10, window_bounds = array<i64: 2, 64, 128>}, {pipeline_mode = #tpu.pipeline_mode<synchronous>, transform_indices = @transform_11, window_bounds = array<i64: 2, 1, 128>}, {pipeline_mode = #tpu.pipeline_mode<synchronous>, transform_indices = @transform_12, window_bounds = array<i64: 2, 128, 64>}, {pipeline_mode = #tpu.pipeline_mode<synchronous>, transform_indices = @transform_13, window_bounds = array<i64: 2, 128, 64>}, {pipeline_mode = #tpu.pipeline_mode<synchronous>, transform_indices = @transform_14, window_bounds = array<i64: 2, 1, 64>}, {pipeline_mode = #tpu.pipeline_mode<synchronous>, transform_indices = @transform_15, window_bounds = array<i64: 2, 1, 64>}, {pipeline_mode = #tpu.pipeline_mode<synchronous>, transform_indices = @transform_16, window_bounds = array<i64: 2, 1, 64>}, {pipeline_mode = #tpu.pipeline_mode<synchronous>, transform_indices = @transform_17, window_bounds = array<i64: 2, 1, 64>}, {pipeline_mode = #tpu.pipeline_mode<synchronous>, transform_indices = @transform_18, window_bounds = array<i64: 2, 64, 128>}, {pipeline_mode = #tpu.pipeline_mode<synchronous>, transform_indices = @transform_19, window_bounds = array<i64: 2, 1, 128>}, {pipeline_mode = #tpu.pipeline_mode<synchronous>, transform_indices = @transform_20, window_bounds = array<i64: 2, 128, 64>}, {pipeline_mode = #tpu.pipeline_mode<synchronous>, transform_indices = @transform_21, window_bounds = array<i64: 2, 1, 64>}, {pipeline_mode = #tpu.pipeline_mode<synchronous>, transform_indices = @transform_22, window_bounds = array<i64: 64, 128>}, {transform_indices = @transform_23, window_bounds = array<i64: 16, 128>}]} {
    %c0 = arith.constant 0 : index
    %c0_0 = arith.constant 0 : index
    %0 = vector.load %arg1[%c0, %c0_0] : memref<16x128xf32, #tpu.memory_space<vmem>>, vector<16x128xf32>
    %c0_1 = arith.constant 0 : index
    %c0_2 = arith.constant 0 : index
    %1 = vector.load %arg2[%c0_1, %c0_2] : memref<128x64xf32, #tpu.memory_space<vmem>>, vector<128x64xf32>
    %cst = arith.constant dense<0.000000e+00> : vector<16x64xf32>
    %2 = tpu.matmul %0, %1, %cst {dimension_numbers = #tpu.dot_dimension_numbers<[1], [0], [0], [1], [0, 0, 1, 1], [], []>} : vector<16x128xf32>, vector<128x64xf32>, vector<16x64xf32> -> vector<16x64xf32>
    %c0_3 = arith.constant 0 : index
    %c0_4 = arith.constant 0 : index
    %3 = vector.load %arg3[%c0_3, %c0_4] : memref<16x64xf32, #tpu.memory_space<vmem>>, vector<16x64xf32>
    %4 = arith.addf %2, %3 : vector<16x64xf32>
    %c0_5 = arith.constant 0 : index
    %c0_6 = arith.constant 0 : index
    %5 = vector.load %arg4[%c0_5, %c0_6] : memref<16x16xf32, #tpu.memory_space<vmem>>, vector<16x16xf32>
    %c0_7 = arith.constant 0 : index
    %c0_8 = arith.constant 0 : index
    %6 = vector.load %arg5[%c0_7, %c0_8] : memref<16x16xf32, #tpu.memory_space<vmem>>, vector<16x16xf32>
    %c0_9 = arith.constant 0 : index
    %c0_10 = arith.constant 0 : index
    %7 = vector.load %arg6[%c0_9, %c0_10] : memref<16x16xf32, #tpu.memory_space<vmem>>, vector<16x16xf32>
    %c0_11 = arith.constant 0 : index
    %c0_12 = arith.constant 0 : index
    %8 = vector.load %arg7[%c0_11, %c0_12] : memref<16x16xf32, #tpu.memory_space<vmem>>, vector<16x16xf32>
    %c0_13 = arith.constant 0 : index
    %c0_14 = arith.constant 0 : index
    %c0_15 = arith.constant 0 : index
    %9 = vector.load %arg8[%c0_13, %c0_14, %c0_15] : memref<2x1x64xf32, #tpu.memory_space<vmem>>, vector<1x1x64xf32>
    %10 = vector.shape_cast %9 : vector<1x1x64xf32> to vector<1x64xf32>
    %c0_16 = arith.constant 0 : index
    %c0_17 = arith.constant 0 : index
    %c0_18 = arith.constant 0 : index
    %11 = vector.load %arg9[%c0_16, %c0_17, %c0_18] : memref<2x1x64xf32, #tpu.memory_space<vmem>>, vector<1x1x64xf32>
    %12 = vector.shape_cast %11 : vector<1x1x64xf32> to vector<1x64xf32>
    %cst_19 = arith.constant dense<0.000000e+00> : vector<16xf32>
    %13 = vector.multi_reduction <add>, %4, %cst_19 [1] : vector<16x64xf32> to vector<16xf32>
    %14 = vector.shape_cast %13 : vector<16xf32> to vector<16x1xf32>
    %cst_20 = arith.constant 6.400000e+01 : f32
    %15 = vector.broadcast %cst_20 : f32 to vector<16x1xf32>
    %16 = arith.divf %14, %15 : vector<16x1xf32>
    %17 = vector.broadcast %16 : vector<16x1xf32> to vector<16x64xf32>
    %18 = arith.subf %4, %17 : vector<16x64xf32>
    %19 = arith.mulf %18, %18 : vector<16x64xf32>
    %cst_21 = arith.constant dense<0.000000e+00> : vector<16xf32>
    %20 = vector.multi_reduction <add>, %19, %cst_21 [1] : vector<16x64xf32> to vector<16xf32>
    %21 = vector.shape_cast %20 : vector<16xf32> to vector<16x1xf32>
    %cst_22 = arith.constant 6.400000e+01 : f32
    %22 = vector.broadcast %cst_22 : f32 to vector<16x1xf32>
    %23 = arith.divf %21, %22 : vector<16x1xf32>
    %cst_23 = arith.constant 9.99999997E-7 : f32
    %24 = vector.broadcast %cst_23 : f32 to vector<16x1xf32>
    %25 = arith.addf %23, %24 : vector<16x1xf32>
    %26 = math.rsqrt %25 : vector<16x1xf32>
    %27 = vector.broadcast %26 : vector<16x1xf32> to vector<16x64xf32>
    %28 = arith.mulf %18, %27 : vector<16x64xf32>
    %29 = vector.broadcast %10 : vector<1x64xf32> to vector<16x64xf32>
    %30 = arith.mulf %28, %29 : vector<16x64xf32>
    %31 = vector.broadcast %12 : vector<1x64xf32> to vector<16x64xf32>
    %32 = arith.addf %30, %31 : vector<16x64xf32>
    %cst_24 = arith.constant dense<0.000000e+00> : vector<16x64xf32>
    %33 = tpu.matmul %5, %32, %cst_24 {dimension_numbers = #tpu.dot_dimension_numbers<[1], [0], [0], [1], [0, 0, 1, 1], [], []>} : vector<16x16xf32>, vector<16x64xf32>, vector<16x64xf32> -> vector<16x64xf32>
    %cst_25 = arith.constant dense<0.000000e+00> : vector<16x64xf32>
    %34 = tpu.matmul %6, %32, %cst_25 {dimension_numbers = #tpu.dot_dimension_numbers<[1], [0], [0], [1], [0, 0, 1, 1], [], []>} : vector<16x16xf32>, vector<16x64xf32>, vector<16x64xf32> -> vector<16x64xf32>
    %c0_26 = arith.constant 0 : index
    %c0_27 = arith.constant 0 : index
    %c0_28 = arith.constant 0 : index
    %35 = vector.load %arg10[%c0_26, %c0_27, %c0_28] : memref<2x64x128xf32, #tpu.memory_space<vmem>>, vector<1x64x128xf32>
    %36 = vector.shape_cast %35 : vector<1x64x128xf32> to vector<64x128xf32>
    %cst_29 = arith.constant dense<0.000000e+00> : vector<16x128xf32>
    %37 = tpu.matmul %33, %36, %cst_29 {dimension_numbers = #tpu.dot_dimension_numbers<[1], [0], [0], [1], [0, 0, 1, 1], [], []>} : vector<16x64xf32>, vector<64x128xf32>, vector<16x128xf32> -> vector<16x128xf32>
    %c0_30 = arith.constant 0 : index
    %c0_31 = arith.constant 0 : index
    %c0_32 = arith.constant 0 : index
    %38 = vector.load %arg11[%c0_30, %c0_31, %c0_32] : memref<2x64x128xf32, #tpu.memory_space<vmem>>, vector<1x64x128xf32>
    %39 = vector.shape_cast %38 : vector<1x64x128xf32> to vector<64x128xf32>
    %cst_33 = arith.constant dense<0.000000e+00> : vector<16x128xf32>
    %40 = tpu.matmul %34, %39, %cst_33 {dimension_numbers = #tpu.dot_dimension_numbers<[1], [0], [0], [1], [0, 0, 1, 1], [], []>} : vector<16x64xf32>, vector<64x128xf32>, vector<16x128xf32> -> vector<16x128xf32>
    %41 = arith.addf %37, %40 : vector<16x128xf32>
    %c0_34 = arith.constant 0 : index
    %c0_35 = arith.constant 0 : index
    %c0_36 = arith.constant 0 : index
    %42 = vector.load %arg12[%c0_34, %c0_35, %c0_36] : memref<2x1x128xf32, #tpu.memory_space<vmem>>, vector<1x1x128xf32>
    %43 = vector.shape_cast %42 : vector<1x1x128xf32> to vector<1x128xf32>
    %44 = vector.broadcast %43 : vector<1x128xf32> to vector<16x128xf32>
    %45 = arith.addf %41, %44 : vector<16x128xf32>
    %cst_37 = arith.constant 0.000000e+00 : f32
    %46 = vector.broadcast %cst_37 : f32 to vector<16x128xf32>
    %47 = arith.maximumf %45, %46 : vector<16x128xf32>
    %c0_38 = arith.constant 0 : index
    %c0_39 = arith.constant 0 : index
    %c0_40 = arith.constant 0 : index
    %48 = vector.load %arg13[%c0_38, %c0_39, %c0_40] : memref<2x128x64xf32, #tpu.memory_space<vmem>>, vector<1x128x64xf32>
    %49 = vector.shape_cast %48 : vector<1x128x64xf32> to vector<128x64xf32>
    %cst_41 = arith.constant dense<0.000000e+00> : vector<16x64xf32>
    %50 = tpu.matmul %47, %49, %cst_41 {dimension_numbers = #tpu.dot_dimension_numbers<[1], [0], [0], [1], [0, 0, 1, 1], [], []>} : vector<16x128xf32>, vector<128x64xf32>, vector<16x64xf32> -> vector<16x64xf32>
    %c0_42 = arith.constant 0 : index
    %c0_43 = arith.constant 0 : index
    %c0_44 = arith.constant 0 : index
    %51 = vector.load %arg15[%c0_42, %c0_43, %c0_44] : memref<2x1x64xf32, #tpu.memory_space<vmem>>, vector<1x1x64xf32>
    %52 = vector.shape_cast %51 : vector<1x1x64xf32> to vector<1x64xf32>
    %53 = vector.broadcast %52 : vector<1x64xf32> to vector<16x64xf32>
    %54 = arith.addf %50, %53 : vector<16x64xf32>
    %cst_45 = arith.constant 0.00999999977 : f32
    %55 = vector.broadcast %cst_45 : f32 to vector<16x64xf32>
    %56 = arith.cmpf ogt, %54, %55 : vector<16x64xf32>
    %cst_46 = arith.constant 0.00999999977 : f32
    %57 = vector.broadcast %cst_46 : f32 to vector<16x64xf32>
    %58 = arith.subf %54, %57 : vector<16x64xf32>
    %cst_47 = arith.constant -0.00999999977 : f32
    %59 = vector.broadcast %cst_47 : f32 to vector<16x64xf32>
    %60 = arith.cmpf olt, %54, %59 : vector<16x64xf32>
    %cst_48 = arith.constant 0.00999999977 : f32
    %61 = vector.broadcast %cst_48 : f32 to vector<16x64xf32>
    %62 = arith.addf %54, %61 : vector<16x64xf32>
    %cst_49 = arith.constant 0.000000e+00 : f32
    %63 = vector.broadcast %cst_49 : f32 to vector<16x64xf32>
    %64 = arith.select %60, %62, %63 : vector<16x64xi1>, vector<16x64xf32>
    %65 = arith.select %56, %58, %64 : vector<16x64xi1>, vector<16x64xf32>
    %c0_50 = arith.constant 0 : index
    %c0_51 = arith.constant 0 : index
    %c0_52 = arith.constant 0 : index
    %66 = vector.load %arg14[%c0_50, %c0_51, %c0_52] : memref<2x128x64xf32, #tpu.memory_space<vmem>>, vector<1x128x64xf32>
    %67 = vector.shape_cast %66 : vector<1x128x64xf32> to vector<128x64xf32>
    %cst_53 = arith.constant dense<0.000000e+00> : vector<16x64xf32>
    %68 = tpu.matmul %47, %67, %cst_53 {dimension_numbers = #tpu.dot_dimension_numbers<[1], [0], [0], [1], [0, 0, 1, 1], [], []>} : vector<16x128xf32>, vector<128x64xf32>, vector<16x64xf32> -> vector<16x64xf32>
    %c0_54 = arith.constant 0 : index
    %c0_55 = arith.constant 0 : index
    %c0_56 = arith.constant 0 : index
    %69 = vector.load %arg16[%c0_54, %c0_55, %c0_56] : memref<2x1x64xf32, #tpu.memory_space<vmem>>, vector<1x1x64xf32>
    %70 = vector.shape_cast %69 : vector<1x1x64xf32> to vector<1x64xf32>
    %71 = vector.broadcast %70 : vector<1x64xf32> to vector<16x64xf32>
    %72 = arith.addf %68, %71 : vector<16x64xf32>
    %cst_57 = arith.constant 0.00999999977 : f32
    %73 = vector.broadcast %cst_57 : f32 to vector<16x64xf32>
    %74 = arith.cmpf ogt, %72, %73 : vector<16x64xf32>
    %cst_58 = arith.constant 0.00999999977 : f32
    %75 = vector.broadcast %cst_58 : f32 to vector<16x64xf32>
    %76 = arith.subf %72, %75 : vector<16x64xf32>
    %cst_59 = arith.constant -0.00999999977 : f32
    %77 = vector.broadcast %cst_59 : f32 to vector<16x64xf32>
    %78 = arith.cmpf olt, %72, %77 : vector<16x64xf32>
    %cst_60 = arith.constant 0.00999999977 : f32
    %79 = vector.broadcast %cst_60 : f32 to vector<16x64xf32>
    %80 = arith.addf %72, %79 : vector<16x64xf32>
    %cst_61 = arith.constant 0.000000e+00 : f32
    %81 = vector.broadcast %cst_61 : f32 to vector<16x64xf32>
    %82 = arith.select %78, %80, %81 : vector<16x64xi1>, vector<16x64xf32>
    %83 = arith.select %74, %76, %82 : vector<16x64xi1>, vector<16x64xf32>
    %cst_62 = arith.constant dense<0.000000e+00> : vector<16x64xf32>
    %84 = tpu.matmul %7, %65, %cst_62 {dimension_numbers = #tpu.dot_dimension_numbers<[1], [0], [0], [1], [0, 0, 1, 1], [], []>} : vector<16x16xf32>, vector<16x64xf32>, vector<16x64xf32> -> vector<16x64xf32>
    %cst_63 = arith.constant dense<0.000000e+00> : vector<16x64xf32>
    %85 = tpu.matmul %8, %83, %cst_63 {dimension_numbers = #tpu.dot_dimension_numbers<[1], [0], [0], [1], [0, 0, 1, 1], [], []>} : vector<16x16xf32>, vector<16x64xf32>, vector<16x64xf32> -> vector<16x64xf32>
    %86 = arith.addf %84, %85 : vector<16x64xf32>
    %87 = arith.addf %86, %32 : vector<16x64xf32>
    %88 = arith.addf %87, %4 : vector<16x64xf32>
    %c0_64 = arith.constant 0 : index
    %c0_65 = arith.constant 0 : index
    %c0_66 = arith.constant 0 : index
    %89 = vector.load %arg17[%c0_64, %c0_65, %c0_66] : memref<2x1x64xf32, #tpu.memory_space<vmem>>, vector<1x1x64xf32>
    %90 = vector.shape_cast %89 : vector<1x1x64xf32> to vector<1x64xf32>
    %c0_67 = arith.constant 0 : index
    %c0_68 = arith.constant 0 : index
    %c0_69 = arith.constant 0 : index
    %91 = vector.load %arg18[%c0_67, %c0_68, %c0_69] : memref<2x1x64xf32, #tpu.memory_space<vmem>>, vector<1x1x64xf32>
    %92 = vector.shape_cast %91 : vector<1x1x64xf32> to vector<1x64xf32>
    %cst_70 = arith.constant dense<0.000000e+00> : vector<16xf32>
    %93 = vector.multi_reduction <add>, %88, %cst_70 [1] : vector<16x64xf32> to vector<16xf32>
    %94 = vector.shape_cast %93 : vector<16xf32> to vector<16x1xf32>
    %cst_71 = arith.constant 6.400000e+01 : f32
    %95 = vector.broadcast %cst_71 : f32 to vector<16x1xf32>
    %96 = arith.divf %94, %95 : vector<16x1xf32>
    %97 = vector.broadcast %96 : vector<16x1xf32> to vector<16x64xf32>
    %98 = arith.subf %88, %97 : vector<16x64xf32>
    %99 = arith.mulf %98, %98 : vector<16x64xf32>
    %cst_72 = arith.constant dense<0.000000e+00> : vector<16xf32>
    %100 = vector.multi_reduction <add>, %99, %cst_72 [1] : vector<16x64xf32> to vector<16xf32>
    %101 = vector.shape_cast %100 : vector<16xf32> to vector<16x1xf32>
    %cst_73 = arith.constant 6.400000e+01 : f32
    %102 = vector.broadcast %cst_73 : f32 to vector<16x1xf32>
    %103 = arith.divf %101, %102 : vector<16x1xf32>
    %cst_74 = arith.constant 9.99999997E-7 : f32
    %104 = vector.broadcast %cst_74 : f32 to vector<16x1xf32>
    %105 = arith.addf %103, %104 : vector<16x1xf32>
    %106 = math.rsqrt %105 : vector<16x1xf32>
    %107 = vector.broadcast %106 : vector<16x1xf32> to vector<16x64xf32>
    %108 = arith.mulf %98, %107 : vector<16x64xf32>
    %109 = vector.broadcast %90 : vector<1x64xf32> to vector<16x64xf32>
    %110 = arith.mulf %108, %109 : vector<16x64xf32>
    %111 = vector.broadcast %92 : vector<1x64xf32> to vector<16x64xf32>
    %112 = arith.addf %110, %111 : vector<16x64xf32>
    %c0_75 = arith.constant 0 : index
    %c0_76 = arith.constant 0 : index
    %c0_77 = arith.constant 0 : index
    %113 = vector.load %arg19[%c0_75, %c0_76, %c0_77] : memref<2x64x128xf32, #tpu.memory_space<vmem>>, vector<1x64x128xf32>
    %114 = vector.shape_cast %113 : vector<1x64x128xf32> to vector<64x128xf32>
    %cst_78 = arith.constant dense<0.000000e+00> : vector<16x128xf32>
    %115 = tpu.matmul %112, %114, %cst_78 {dimension_numbers = #tpu.dot_dimension_numbers<[1], [0], [0], [1], [0, 0, 1, 1], [], []>} : vector<16x64xf32>, vector<64x128xf32>, vector<16x128xf32> -> vector<16x128xf32>
    %c0_79 = arith.constant 0 : index
    %c0_80 = arith.constant 0 : index
    %c0_81 = arith.constant 0 : index
    %116 = vector.load %arg20[%c0_79, %c0_80, %c0_81] : memref<2x1x128xf32, #tpu.memory_space<vmem>>, vector<1x1x128xf32>
    %117 = vector.shape_cast %116 : vector<1x1x128xf32> to vector<1x128xf32>
    %118 = vector.broadcast %117 : vector<1x128xf32> to vector<16x128xf32>
    %119 = arith.addf %115, %118 : vector<16x128xf32>
    %cst_82 = arith.constant 5.000000e-01 : f32
    %120 = vector.broadcast %cst_82 : f32 to vector<16x128xf32>
    %121 = arith.mulf %120, %119 : vector<16x128xf32>
    %cst_83 = arith.constant 0.707106769 : f32
    %122 = vector.broadcast %cst_83 : f32 to vector<16x128xf32>
    %123 = arith.mulf %119, %122 : vector<16x128xf32>
    %cst_84 = arith.constant 0.000000e+00 : f32
    %124 = vector.broadcast %cst_84 : f32 to vector<16x128xf32>
    %125 = arith.cmpf oge, %123, %124 : vector<16x128xf32>
    %cst_85 = arith.constant 1.000000e+00 : f32
    %cst_86 = arith.constant -1.000000e+00 : f32
    %126 = vector.broadcast %cst_85 : f32 to vector<16x128xf32>
    %127 = vector.broadcast %cst_86 : f32 to vector<16x128xf32>
    %128 = arith.select %125, %126, %127 : vector<16x128xi1>, vector<16x128xf32>
    %129 = math.absf %123 : vector<16x128xf32>
    %cst_87 = arith.constant 0.327591091 : f32
    %130 = vector.broadcast %cst_87 : f32 to vector<16x128xf32>
    %131 = arith.mulf %130, %129 : vector<16x128xf32>
    %cst_88 = arith.constant 1.000000e+00 : f32
    %132 = vector.broadcast %cst_88 : f32 to vector<16x128xf32>
    %133 = arith.addf %132, %131 : vector<16x128xf32>
    %cst_89 = arith.constant 1.000000e+00 : f32
    %134 = vector.broadcast %cst_89 : f32 to vector<16x128xf32>
    %135 = arith.divf %134, %133 : vector<16x128xf32>
    %cst_90 = arith.constant 1.06140542 : f32
    %136 = vector.broadcast %cst_90 : f32 to vector<16x128xf32>
    %137 = arith.mulf %136, %135 : vector<16x128xf32>
    %cst_91 = arith.constant -1.45315206 : f32
    %138 = vector.broadcast %cst_91 : f32 to vector<16x128xf32>
    %139 = arith.addf %137, %138 : vector<16x128xf32>
    %140 = arith.mulf %139, %135 : vector<16x128xf32>
    %cst_92 = arith.constant 1.42141378 : f32
    %141 = vector.broadcast %cst_92 : f32 to vector<16x128xf32>
    %142 = arith.addf %140, %141 : vector<16x128xf32>
    %143 = arith.mulf %142, %135 : vector<16x128xf32>
    %cst_93 = arith.constant -0.284496725 : f32
    %144 = vector.broadcast %cst_93 : f32 to vector<16x128xf32>
    %145 = arith.addf %143, %144 : vector<16x128xf32>
    %146 = arith.mulf %145, %135 : vector<16x128xf32>
    %cst_94 = arith.constant 0.254829586 : f32
    %147 = vector.broadcast %cst_94 : f32 to vector<16x128xf32>
    %148 = arith.addf %146, %147 : vector<16x128xf32>
    %149 = arith.mulf %148, %135 : vector<16x128xf32>
    %cst_95 = arith.constant 0.000000e+00 : f32
    %150 = vector.broadcast %cst_95 : f32 to vector<16x128xf32>
    %151 = arith.subf %150, %129 : vector<16x128xf32>
    %152 = arith.mulf %151, %129 : vector<16x128xf32>
    %153 = math.exp %152 : vector<16x128xf32>
    %154 = arith.mulf %149, %153 : vector<16x128xf32>
    %cst_96 = arith.constant 1.000000e+00 : f32
    %155 = vector.broadcast %cst_96 : f32 to vector<16x128xf32>
    %156 = arith.subf %155, %154 : vector<16x128xf32>
    %157 = arith.mulf %128, %156 : vector<16x128xf32>
    %cst_97 = arith.constant 1.000000e+00 : f32
    %158 = vector.broadcast %cst_97 : f32 to vector<16x128xf32>
    %159 = arith.addf %158, %157 : vector<16x128xf32>
    %160 = arith.mulf %121, %159 : vector<16x128xf32>
    %c0_98 = arith.constant 0 : index
    %c0_99 = arith.constant 0 : index
    %c0_100 = arith.constant 0 : index
    %161 = vector.load %arg21[%c0_98, %c0_99, %c0_100] : memref<2x128x64xf32, #tpu.memory_space<vmem>>, vector<1x128x64xf32>
    %162 = vector.shape_cast %161 : vector<1x128x64xf32> to vector<128x64xf32>
    %cst_101 = arith.constant dense<0.000000e+00> : vector<16x64xf32>
    %163 = tpu.matmul %160, %162, %cst_101 {dimension_numbers = #tpu.dot_dimension_numbers<[1], [0], [0], [1], [0, 0, 1, 1], [], []>} : vector<16x128xf32>, vector<128x64xf32>, vector<16x64xf32> -> vector<16x64xf32>
    %c0_102 = arith.constant 0 : index
    %c0_103 = arith.constant 0 : index
    %c0_104 = arith.constant 0 : index
    %164 = vector.load %arg22[%c0_102, %c0_103, %c0_104] : memref<2x1x64xf32, #tpu.memory_space<vmem>>, vector<1x1x64xf32>
    %165 = vector.shape_cast %164 : vector<1x1x64xf32> to vector<1x64xf32>
    %166 = vector.broadcast %165 : vector<1x64xf32> to vector<16x64xf32>
    %167 = arith.addf %163, %166 : vector<16x64xf32>
    %168 = arith.addf %167, %88 : vector<16x64xf32>
    %c1 = arith.constant 1 : index
    %c0_105 = arith.constant 0 : index
    %c0_106 = arith.constant 0 : index
    %169 = vector.load %arg8[%c1, %c0_105, %c0_106] : memref<2x1x64xf32, #tpu.memory_space<vmem>>, vector<1x1x64xf32>
    %170 = vector.shape_cast %169 : vector<1x1x64xf32> to vector<1x64xf32>
    %c1_107 = arith.constant 1 : index
    %c0_108 = arith.constant 0 : index
    %c0_109 = arith.constant 0 : index
    %171 = vector.load %arg9[%c1_107, %c0_108, %c0_109] : memref<2x1x64xf32, #tpu.memory_space<vmem>>, vector<1x1x64xf32>
    %172 = vector.shape_cast %171 : vector<1x1x64xf32> to vector<1x64xf32>
    %cst_110 = arith.constant dense<0.000000e+00> : vector<16xf32>
    %173 = vector.multi_reduction <add>, %168, %cst_110 [1] : vector<16x64xf32> to vector<16xf32>
    %174 = vector.shape_cast %173 : vector<16xf32> to vector<16x1xf32>
    %cst_111 = arith.constant 6.400000e+01 : f32
    %175 = vector.broadcast %cst_111 : f32 to vector<16x1xf32>
    %176 = arith.divf %174, %175 : vector<16x1xf32>
    %177 = vector.broadcast %176 : vector<16x1xf32> to vector<16x64xf32>
    %178 = arith.subf %168, %177 : vector<16x64xf32>
    %179 = arith.mulf %178, %178 : vector<16x64xf32>
    %cst_112 = arith.constant dense<0.000000e+00> : vector<16xf32>
    %180 = vector.multi_reduction <add>, %179, %cst_112 [1] : vector<16x64xf32> to vector<16xf32>
    %181 = vector.shape_cast %180 : vector<16xf32> to vector<16x1xf32>
    %cst_113 = arith.constant 6.400000e+01 : f32
    %182 = vector.broadcast %cst_113 : f32 to vector<16x1xf32>
    %183 = arith.divf %181, %182 : vector<16x1xf32>
    %cst_114 = arith.constant 9.99999997E-7 : f32
    %184 = vector.broadcast %cst_114 : f32 to vector<16x1xf32>
    %185 = arith.addf %183, %184 : vector<16x1xf32>
    %186 = math.rsqrt %185 : vector<16x1xf32>
    %187 = vector.broadcast %186 : vector<16x1xf32> to vector<16x64xf32>
    %188 = arith.mulf %178, %187 : vector<16x64xf32>
    %189 = vector.broadcast %170 : vector<1x64xf32> to vector<16x64xf32>
    %190 = arith.mulf %188, %189 : vector<16x64xf32>
    %191 = vector.broadcast %172 : vector<1x64xf32> to vector<16x64xf32>
    %192 = arith.addf %190, %191 : vector<16x64xf32>
    %cst_115 = arith.constant dense<0.000000e+00> : vector<16x64xf32>
    %193 = tpu.matmul %5, %192, %cst_115 {dimension_numbers = #tpu.dot_dimension_numbers<[1], [0], [0], [1], [0, 0, 1, 1], [], []>} : vector<16x16xf32>, vector<16x64xf32>, vector<16x64xf32> -> vector<16x64xf32>
    %cst_116 = arith.constant dense<0.000000e+00> : vector<16x64xf32>
    %194 = tpu.matmul %6, %192, %cst_116 {dimension_numbers = #tpu.dot_dimension_numbers<[1], [0], [0], [1], [0, 0, 1, 1], [], []>} : vector<16x16xf32>, vector<16x64xf32>, vector<16x64xf32> -> vector<16x64xf32>
    %c1_117 = arith.constant 1 : index
    %c0_118 = arith.constant 0 : index
    %c0_119 = arith.constant 0 : index
    %195 = vector.load %arg10[%c1_117, %c0_118, %c0_119] : memref<2x64x128xf32, #tpu.memory_space<vmem>>, vector<1x64x128xf32>
    %196 = vector.shape_cast %195 : vector<1x64x128xf32> to vector<64x128xf32>
    %cst_120 = arith.constant dense<0.000000e+00> : vector<16x128xf32>
    %197 = tpu.matmul %193, %196, %cst_120 {dimension_numbers = #tpu.dot_dimension_numbers<[1], [0], [0], [1], [0, 0, 1, 1], [], []>} : vector<16x64xf32>, vector<64x128xf32>, vector<16x128xf32> -> vector<16x128xf32>
    %c1_121 = arith.constant 1 : index
    %c0_122 = arith.constant 0 : index
    %c0_123 = arith.constant 0 : index
    %198 = vector.load %arg11[%c1_121, %c0_122, %c0_123] : memref<2x64x128xf32, #tpu.memory_space<vmem>>, vector<1x64x128xf32>
    %199 = vector.shape_cast %198 : vector<1x64x128xf32> to vector<64x128xf32>
    %cst_124 = arith.constant dense<0.000000e+00> : vector<16x128xf32>
    %200 = tpu.matmul %194, %199, %cst_124 {dimension_numbers = #tpu.dot_dimension_numbers<[1], [0], [0], [1], [0, 0, 1, 1], [], []>} : vector<16x64xf32>, vector<64x128xf32>, vector<16x128xf32> -> vector<16x128xf32>
    %201 = arith.addf %197, %200 : vector<16x128xf32>
    %c1_125 = arith.constant 1 : index
    %c0_126 = arith.constant 0 : index
    %c0_127 = arith.constant 0 : index
    %202 = vector.load %arg12[%c1_125, %c0_126, %c0_127] : memref<2x1x128xf32, #tpu.memory_space<vmem>>, vector<1x1x128xf32>
    %203 = vector.shape_cast %202 : vector<1x1x128xf32> to vector<1x128xf32>
    %204 = vector.broadcast %203 : vector<1x128xf32> to vector<16x128xf32>
    %205 = arith.addf %201, %204 : vector<16x128xf32>
    %cst_128 = arith.constant 0.000000e+00 : f32
    %206 = vector.broadcast %cst_128 : f32 to vector<16x128xf32>
    %207 = arith.maximumf %205, %206 : vector<16x128xf32>
    %c1_129 = arith.constant 1 : index
    %c0_130 = arith.constant 0 : index
    %c0_131 = arith.constant 0 : index
    %208 = vector.load %arg13[%c1_129, %c0_130, %c0_131] : memref<2x128x64xf32, #tpu.memory_space<vmem>>, vector<1x128x64xf32>
    %209 = vector.shape_cast %208 : vector<1x128x64xf32> to vector<128x64xf32>
    %cst_132 = arith.constant dense<0.000000e+00> : vector<16x64xf32>
    %210 = tpu.matmul %207, %209, %cst_132 {dimension_numbers = #tpu.dot_dimension_numbers<[1], [0], [0], [1], [0, 0, 1, 1], [], []>} : vector<16x128xf32>, vector<128x64xf32>, vector<16x64xf32> -> vector<16x64xf32>
    %c1_133 = arith.constant 1 : index
    %c0_134 = arith.constant 0 : index
    %c0_135 = arith.constant 0 : index
    %211 = vector.load %arg15[%c1_133, %c0_134, %c0_135] : memref<2x1x64xf32, #tpu.memory_space<vmem>>, vector<1x1x64xf32>
    %212 = vector.shape_cast %211 : vector<1x1x64xf32> to vector<1x64xf32>
    %213 = vector.broadcast %212 : vector<1x64xf32> to vector<16x64xf32>
    %214 = arith.addf %210, %213 : vector<16x64xf32>
    %cst_136 = arith.constant 0.00999999977 : f32
    %215 = vector.broadcast %cst_136 : f32 to vector<16x64xf32>
    %216 = arith.cmpf ogt, %214, %215 : vector<16x64xf32>
    %cst_137 = arith.constant 0.00999999977 : f32
    %217 = vector.broadcast %cst_137 : f32 to vector<16x64xf32>
    %218 = arith.subf %214, %217 : vector<16x64xf32>
    %cst_138 = arith.constant -0.00999999977 : f32
    %219 = vector.broadcast %cst_138 : f32 to vector<16x64xf32>
    %220 = arith.cmpf olt, %214, %219 : vector<16x64xf32>
    %cst_139 = arith.constant 0.00999999977 : f32
    %221 = vector.broadcast %cst_139 : f32 to vector<16x64xf32>
    %222 = arith.addf %214, %221 : vector<16x64xf32>
    %cst_140 = arith.constant 0.000000e+00 : f32
    %223 = vector.broadcast %cst_140 : f32 to vector<16x64xf32>
    %224 = arith.select %220, %222, %223 : vector<16x64xi1>, vector<16x64xf32>
    %225 = arith.select %216, %218, %224 : vector<16x64xi1>, vector<16x64xf32>
    %c1_141 = arith.constant 1 : index
    %c0_142 = arith.constant 0 : index
    %c0_143 = arith.constant 0 : index
    %226 = vector.load %arg14[%c1_141, %c0_142, %c0_143] : memref<2x128x64xf32, #tpu.memory_space<vmem>>, vector<1x128x64xf32>
    %227 = vector.shape_cast %226 : vector<1x128x64xf32> to vector<128x64xf32>
    %cst_144 = arith.constant dense<0.000000e+00> : vector<16x64xf32>
    %228 = tpu.matmul %207, %227, %cst_144 {dimension_numbers = #tpu.dot_dimension_numbers<[1], [0], [0], [1], [0, 0, 1, 1], [], []>} : vector<16x128xf32>, vector<128x64xf32>, vector<16x64xf32> -> vector<16x64xf32>
    %c1_145 = arith.constant 1 : index
    %c0_146 = arith.constant 0 : index
    %c0_147 = arith.constant 0 : index
    %229 = vector.load %arg16[%c1_145, %c0_146, %c0_147] : memref<2x1x64xf32, #tpu.memory_space<vmem>>, vector<1x1x64xf32>
    %230 = vector.shape_cast %229 : vector<1x1x64xf32> to vector<1x64xf32>
    %231 = vector.broadcast %230 : vector<1x64xf32> to vector<16x64xf32>
    %232 = arith.addf %228, %231 : vector<16x64xf32>
    %cst_148 = arith.constant 0.00999999977 : f32
    %233 = vector.broadcast %cst_148 : f32 to vector<16x64xf32>
    %234 = arith.cmpf ogt, %232, %233 : vector<16x64xf32>
    %cst_149 = arith.constant 0.00999999977 : f32
    %235 = vector.broadcast %cst_149 : f32 to vector<16x64xf32>
    %236 = arith.subf %232, %235 : vector<16x64xf32>
    %cst_150 = arith.constant -0.00999999977 : f32
    %237 = vector.broadcast %cst_150 : f32 to vector<16x64xf32>
    %238 = arith.cmpf olt, %232, %237 : vector<16x64xf32>
    %cst_151 = arith.constant 0.00999999977 : f32
    %239 = vector.broadcast %cst_151 : f32 to vector<16x64xf32>
    %240 = arith.addf %232, %239 : vector<16x64xf32>
    %cst_152 = arith.constant 0.000000e+00 : f32
    %241 = vector.broadcast %cst_152 : f32 to vector<16x64xf32>
    %242 = arith.select %238, %240, %241 : vector<16x64xi1>, vector<16x64xf32>
    %243 = arith.select %234, %236, %242 : vector<16x64xi1>, vector<16x64xf32>
    %cst_153 = arith.constant dense<0.000000e+00> : vector<16x64xf32>
    %244 = tpu.matmul %7, %225, %cst_153 {dimension_numbers = #tpu.dot_dimension_numbers<[1], [0], [0], [1], [0, 0, 1, 1], [], []>} : vector<16x16xf32>, vector<16x64xf32>, vector<16x64xf32> -> vector<16x64xf32>
    %cst_154 = arith.constant dense<0.000000e+00> : vector<16x64xf32>
    %245 = tpu.matmul %8, %243, %cst_154 {dimension_numbers = #tpu.dot_dimension_numbers<[1], [0], [0], [1], [0, 0, 1, 1], [], []>} : vector<16x16xf32>, vector<16x64xf32>, vector<16x64xf32> -> vector<16x64xf32>
    %246 = arith.addf %244, %245 : vector<16x64xf32>
    %247 = arith.addf %246, %192 : vector<16x64xf32>
    %248 = arith.addf %247, %168 : vector<16x64xf32>
    %c1_155 = arith.constant 1 : index
    %c0_156 = arith.constant 0 : index
    %c0_157 = arith.constant 0 : index
    %249 = vector.load %arg17[%c1_155, %c0_156, %c0_157] : memref<2x1x64xf32, #tpu.memory_space<vmem>>, vector<1x1x64xf32>
    %250 = vector.shape_cast %249 : vector<1x1x64xf32> to vector<1x64xf32>
    %c1_158 = arith.constant 1 : index
    %c0_159 = arith.constant 0 : index
    %c0_160 = arith.constant 0 : index
    %251 = vector.load %arg18[%c1_158, %c0_159, %c0_160] : memref<2x1x64xf32, #tpu.memory_space<vmem>>, vector<1x1x64xf32>
    %252 = vector.shape_cast %251 : vector<1x1x64xf32> to vector<1x64xf32>
    %cst_161 = arith.constant dense<0.000000e+00> : vector<16xf32>
    %253 = vector.multi_reduction <add>, %248, %cst_161 [1] : vector<16x64xf32> to vector<16xf32>
    %254 = vector.shape_cast %253 : vector<16xf32> to vector<16x1xf32>
    %cst_162 = arith.constant 6.400000e+01 : f32
    %255 = vector.broadcast %cst_162 : f32 to vector<16x1xf32>
    %256 = arith.divf %254, %255 : vector<16x1xf32>
    %257 = vector.broadcast %256 : vector<16x1xf32> to vector<16x64xf32>
    %258 = arith.subf %248, %257 : vector<16x64xf32>
    %259 = arith.mulf %258, %258 : vector<16x64xf32>
    %cst_163 = arith.constant dense<0.000000e+00> : vector<16xf32>
    %260 = vector.multi_reduction <add>, %259, %cst_163 [1] : vector<16x64xf32> to vector<16xf32>
    %261 = vector.shape_cast %260 : vector<16xf32> to vector<16x1xf32>
    %cst_164 = arith.constant 6.400000e+01 : f32
    %262 = vector.broadcast %cst_164 : f32 to vector<16x1xf32>
    %263 = arith.divf %261, %262 : vector<16x1xf32>
    %cst_165 = arith.constant 9.99999997E-7 : f32
    %264 = vector.broadcast %cst_165 : f32 to vector<16x1xf32>
    %265 = arith.addf %263, %264 : vector<16x1xf32>
    %266 = math.rsqrt %265 : vector<16x1xf32>
    %267 = vector.broadcast %266 : vector<16x1xf32> to vector<16x64xf32>
    %268 = arith.mulf %258, %267 : vector<16x64xf32>
    %269 = vector.broadcast %250 : vector<1x64xf32> to vector<16x64xf32>
    %270 = arith.mulf %268, %269 : vector<16x64xf32>
    %271 = vector.broadcast %252 : vector<1x64xf32> to vector<16x64xf32>
    %272 = arith.addf %270, %271 : vector<16x64xf32>
    %c1_166 = arith.constant 1 : index
    %c0_167 = arith.constant 0 : index
    %c0_168 = arith.constant 0 : index
    %273 = vector.load %arg19[%c1_166, %c0_167, %c0_168] : memref<2x64x128xf32, #tpu.memory_space<vmem>>, vector<1x64x128xf32>
    %274 = vector.shape_cast %273 : vector<1x64x128xf32> to vector<64x128xf32>
    %cst_169 = arith.constant dense<0.000000e+00> : vector<16x128xf32>
    %275 = tpu.matmul %272, %274, %cst_169 {dimension_numbers = #tpu.dot_dimension_numbers<[1], [0], [0], [1], [0, 0, 1, 1], [], []>} : vector<16x64xf32>, vector<64x128xf32>, vector<16x128xf32> -> vector<16x128xf32>
    %c1_170 = arith.constant 1 : index
    %c0_171 = arith.constant 0 : index
    %c0_172 = arith.constant 0 : index
    %276 = vector.load %arg20[%c1_170, %c0_171, %c0_172] : memref<2x1x128xf32, #tpu.memory_space<vmem>>, vector<1x1x128xf32>
    %277 = vector.shape_cast %276 : vector<1x1x128xf32> to vector<1x128xf32>
    %278 = vector.broadcast %277 : vector<1x128xf32> to vector<16x128xf32>
    %279 = arith.addf %275, %278 : vector<16x128xf32>
    %cst_173 = arith.constant 5.000000e-01 : f32
    %280 = vector.broadcast %cst_173 : f32 to vector<16x128xf32>
    %281 = arith.mulf %280, %279 : vector<16x128xf32>
    %cst_174 = arith.constant 0.707106769 : f32
    %282 = vector.broadcast %cst_174 : f32 to vector<16x128xf32>
    %283 = arith.mulf %279, %282 : vector<16x128xf32>
    %cst_175 = arith.constant 0.000000e+00 : f32
    %284 = vector.broadcast %cst_175 : f32 to vector<16x128xf32>
    %285 = arith.cmpf oge, %283, %284 : vector<16x128xf32>
    %cst_176 = arith.constant 1.000000e+00 : f32
    %cst_177 = arith.constant -1.000000e+00 : f32
    %286 = vector.broadcast %cst_176 : f32 to vector<16x128xf32>
    %287 = vector.broadcast %cst_177 : f32 to vector<16x128xf32>
    %288 = arith.select %285, %286, %287 : vector<16x128xi1>, vector<16x128xf32>
    %289 = math.absf %283 : vector<16x128xf32>
    %cst_178 = arith.constant 0.327591091 : f32
    %290 = vector.broadcast %cst_178 : f32 to vector<16x128xf32>
    %291 = arith.mulf %290, %289 : vector<16x128xf32>
    %cst_179 = arith.constant 1.000000e+00 : f32
    %292 = vector.broadcast %cst_179 : f32 to vector<16x128xf32>
    %293 = arith.addf %292, %291 : vector<16x128xf32>
    %cst_180 = arith.constant 1.000000e+00 : f32
    %294 = vector.broadcast %cst_180 : f32 to vector<16x128xf32>
    %295 = arith.divf %294, %293 : vector<16x128xf32>
    %cst_181 = arith.constant 1.06140542 : f32
    %296 = vector.broadcast %cst_181 : f32 to vector<16x128xf32>
    %297 = arith.mulf %296, %295 : vector<16x128xf32>
    %cst_182 = arith.constant -1.45315206 : f32
    %298 = vector.broadcast %cst_182 : f32 to vector<16x128xf32>
    %299 = arith.addf %297, %298 : vector<16x128xf32>
    %300 = arith.mulf %299, %295 : vector<16x128xf32>
    %cst_183 = arith.constant 1.42141378 : f32
    %301 = vector.broadcast %cst_183 : f32 to vector<16x128xf32>
    %302 = arith.addf %300, %301 : vector<16x128xf32>
    %303 = arith.mulf %302, %295 : vector<16x128xf32>
    %cst_184 = arith.constant -0.284496725 : f32
    %304 = vector.broadcast %cst_184 : f32 to vector<16x128xf32>
    %305 = arith.addf %303, %304 : vector<16x128xf32>
    %306 = arith.mulf %305, %295 : vector<16x128xf32>
    %cst_185 = arith.constant 0.254829586 : f32
    %307 = vector.broadcast %cst_185 : f32 to vector<16x128xf32>
    %308 = arith.addf %306, %307 : vector<16x128xf32>
    %309 = arith.mulf %308, %295 : vector<16x128xf32>
    %cst_186 = arith.constant 0.000000e+00 : f32
    %310 = vector.broadcast %cst_186 : f32 to vector<16x128xf32>
    %311 = arith.subf %310, %289 : vector<16x128xf32>
    %312 = arith.mulf %311, %289 : vector<16x128xf32>
    %313 = math.exp %312 : vector<16x128xf32>
    %314 = arith.mulf %309, %313 : vector<16x128xf32>
    %cst_187 = arith.constant 1.000000e+00 : f32
    %315 = vector.broadcast %cst_187 : f32 to vector<16x128xf32>
    %316 = arith.subf %315, %314 : vector<16x128xf32>
    %317 = arith.mulf %288, %316 : vector<16x128xf32>
    %cst_188 = arith.constant 1.000000e+00 : f32
    %318 = vector.broadcast %cst_188 : f32 to vector<16x128xf32>
    %319 = arith.addf %318, %317 : vector<16x128xf32>
    %320 = arith.mulf %281, %319 : vector<16x128xf32>
    %c1_189 = arith.constant 1 : index
    %c0_190 = arith.constant 0 : index
    %c0_191 = arith.constant 0 : index
    %321 = vector.load %arg21[%c1_189, %c0_190, %c0_191] : memref<2x128x64xf32, #tpu.memory_space<vmem>>, vector<1x128x64xf32>
    %322 = vector.shape_cast %321 : vector<1x128x64xf32> to vector<128x64xf32>
    %cst_192 = arith.constant dense<0.000000e+00> : vector<16x64xf32>
    %323 = tpu.matmul %320, %322, %cst_192 {dimension_numbers = #tpu.dot_dimension_numbers<[1], [0], [0], [1], [0, 0, 1, 1], [], []>} : vector<16x128xf32>, vector<128x64xf32>, vector<16x64xf32> -> vector<16x64xf32>
    %c1_193 = arith.constant 1 : index
    %c0_194 = arith.constant 0 : index
    %c0_195 = arith.constant 0 : index
    %324 = vector.load %arg22[%c1_193, %c0_194, %c0_195] : memref<2x1x64xf32, #tpu.memory_space<vmem>>, vector<1x1x64xf32>
    %325 = vector.shape_cast %324 : vector<1x1x64xf32> to vector<1x64xf32>
    %326 = vector.broadcast %325 : vector<1x64xf32> to vector<16x64xf32>
    %327 = arith.addf %323, %326 : vector<16x64xf32>
    %328 = arith.addf %327, %248 : vector<16x64xf32>
    %c0_196 = arith.constant 0 : index
    %c0_197 = arith.constant 0 : index
    %329 = vector.load %arg23[%c0_196, %c0_197] : memref<64x128xf32, #tpu.memory_space<vmem>>, vector<64x128xf32>
    %cst_198 = arith.constant dense<0.000000e+00> : vector<16x128xf32>
    %330 = tpu.matmul %328, %329, %cst_198 {dimension_numbers = #tpu.dot_dimension_numbers<[1], [0], [0], [1], [0, 0, 1, 1], [], []>} : vector<16x64xf32>, vector<64x128xf32>, vector<16x128xf32> -> vector<16x128xf32>
    %c0_199 = arith.constant 0 : index
    %c0_200 = arith.constant 0 : index
    %331 = vector.load %arg24[%c0_199, %c0_200] : memref<16x128xf32, #tpu.memory_space<vmem>>, vector<16x128xf32>
    tpu.vector_store %arg24[%c0_199, %c0_200], %330 {strides = array<i32>} : memref<16x128xf32, #tpu.memory_space<vmem>>, vector<16x128xf32>,
    return
  }
  func.func @transform_0(%arg0: i32) -> (i32, i32) {
    %c0_i32 = arith.constant 0 : i32
    %c0_i32_0 = arith.constant 0 : i32
    return %arg0, %c0_i32 : i32, i32
  }
  func.func @transform_1(%arg0: i32) -> (i32, i32) {
    %c0_i32 = arith.constant 0 : i32
    %c0_i32_0 = arith.constant 0 : i32
    %c0_i32_1 = arith.constant 0 : i32
    return %c0_i32, %c0_i32_0 : i32, i32
  }
  func.func @transform_2(%arg0: i32) -> (i32, i32) {
    %c0_i32 = arith.constant 0 : i32
    %c0_i32_0 = arith.constant 0 : i32
    %c0_i32_1 = arith.constant 0 : i32
    return %c0_i32, %c0_i32_0 : i32, i32
  }
  func.func @transform_3(%arg0: i32) -> (i32, i32) {
    %c0_i32 = arith.constant 0 : i32
    %c0_i32_0 = arith.constant 0 : i32
    %c0_i32_1 = arith.constant 0 : i32
    return %c0_i32, %c0_i32_0 : i32, i32
  }
  func.func @transform_4(%arg0: i32) -> (i32, i32) {
    %c0_i32 = arith.constant 0 : i32
    %c0_i32_0 = arith.constant 0 : i32
    %c0_i32_1 = arith.constant 0 : i32
    return %c0_i32, %c0_i32_0 : i32, i32
  }
  func.func @transform_5(%arg0: i32) -> (i32, i32) {
    %c0_i32 = arith.constant 0 : i32
    %c0_i32_0 = arith.constant 0 : i32
    %c0_i32_1 = arith.constant 0 : i32
    return %c0_i32, %c0_i32_0 : i32, i32
  }
  func.func @transform_6(%arg0: i32) -> (i32, i32) {
    %c0_i32 = arith.constant 0 : i32
    %c0_i32_0 = arith.constant 0 : i32
    %c0_i32_1 = arith.constant 0 : i32
    return %c0_i32, %c0_i32_0 : i32, i32
  }
  func.func @transform_7(%arg0: i32) -> (i32, i32, i32) {
    %c0_i32 = arith.constant 0 : i32
    %c0_i32_0 = arith.constant 0 : i32
    %c0_i32_1 = arith.constant 0 : i32
    %c0_i32_2 = arith.constant 0 : i32
    return %c0_i32, %c0_i32_0, %c0_i32_1 : i32, i32, i32
  }
  func.func @transform_8(%arg0: i32) -> (i32, i32, i32) {
    %c0_i32 = arith.constant 0 : i32
    %c0_i32_0 = arith.constant 0 : i32
    %c0_i32_1 = arith.constant 0 : i32
    %c0_i32_2 = arith.constant 0 : i32
    return %c0_i32, %c0_i32_0, %c0_i32_1 : i32, i32, i32
  }
  func.func @transform_9(%arg0: i32) -> (i32, i32, i32) {
    %c0_i32 = arith.constant 0 : i32
    %c0_i32_0 = arith.constant 0 : i32
    %c0_i32_1 = arith.constant 0 : i32
    %c0_i32_2 = arith.constant 0 : i32
    return %c0_i32, %c0_i32_0, %c0_i32_1 : i32, i32, i32
  }
  func.func @transform_10(%arg0: i32) -> (i32, i32, i32) {
    %c0_i32 = arith.constant 0 : i32
    %c0_i32_0 = arith.constant 0 : i32
    %c0_i32_1 = arith.constant 0 : i32
    %c0_i32_2 = arith.constant 0 : i32
    return %c0_i32, %c0_i32_0, %c0_i32_1 : i32, i32, i32
  }
  func.func @transform_11(%arg0: i32) -> (i32, i32, i32) {
    %c0_i32 = arith.constant 0 : i32
    %c0_i32_0 = arith.constant 0 : i32
    %c0_i32_1 = arith.constant 0 : i32
    %c0_i32_2 = arith.constant 0 : i32
    return %c0_i32, %c0_i32_0, %c0_i32_1 : i32, i32, i32
  }
  func.func @transform_12(%arg0: i32) -> (i32, i32, i32) {
    %c0_i32 = arith.constant 0 : i32
    %c0_i32_0 = arith.constant 0 : i32
    %c0_i32_1 = arith.constant 0 : i32
    %c0_i32_2 = arith.constant 0 : i32
    return %c0_i32, %c0_i32_0, %c0_i32_1 : i32, i32, i32
  }
  func.func @transform_13(%arg0: i32) -> (i32, i32, i32) {
    %c0_i32 = arith.constant 0 : i32
    %c0_i32_0 = arith.constant 0 : i32
    %c0_i32_1 = arith.constant 0 : i32
    %c0_i32_2 = arith.constant 0 : i32
    return %c0_i32, %c0_i32_0, %c0_i32_1 : i32, i32, i32
  }
  func.func @transform_14(%arg0: i32) -> (i32, i32, i32) {
    %c0_i32 = arith.constant 0 : i32
    %c0_i32_0 = arith.constant 0 : i32
    %c0_i32_1 = arith.constant 0 : i32
    %c0_i32_2 = arith.constant 0 : i32
    return %c0_i32, %c0_i32_0, %c0_i32_1 : i32, i32, i32
  }
  func.func @transform_15(%arg0: i32) -> (i32, i32, i32) {
    %c0_i32 = arith.constant 0 : i32
    %c0_i32_0 = arith.constant 0 : i32
    %c0_i32_1 = arith.constant 0 : i32
    %c0_i32_2 = arith.constant 0 : i32
    return %c0_i32, %c0_i32_0, %c0_i32_1 : i32, i32, i32
  }
  func.func @transform_16(%arg0: i32) -> (i32, i32, i32) {
    %c0_i32 = arith.constant 0 : i32
    %c0_i32_0 = arith.constant 0 : i32
    %c0_i32_1 = arith.constant 0 : i32
    %c0_i32_2 = arith.constant 0 : i32
    return %c0_i32, %c0_i32_0, %c0_i32_1 : i32, i32, i32
  }
  func.func @transform_17(%arg0: i32) -> (i32, i32, i32) {
    %c0_i32 = arith.constant 0 : i32
    %c0_i32_0 = arith.constant 0 : i32
    %c0_i32_1 = arith.constant 0 : i32
    %c0_i32_2 = arith.constant 0 : i32
    return %c0_i32, %c0_i32_0, %c0_i32_1 : i32, i32, i32
  }
  func.func @transform_18(%arg0: i32) -> (i32, i32, i32) {
    %c0_i32 = arith.constant 0 : i32
    %c0_i32_0 = arith.constant 0 : i32
    %c0_i32_1 = arith.constant 0 : i32
    %c0_i32_2 = arith.constant 0 : i32
    return %c0_i32, %c0_i32_0, %c0_i32_1 : i32, i32, i32
  }
  func.func @transform_19(%arg0: i32) -> (i32, i32, i32) {
    %c0_i32 = arith.constant 0 : i32
    %c0_i32_0 = arith.constant 0 : i32
    %c0_i32_1 = arith.constant 0 : i32
    %c0_i32_2 = arith.constant 0 : i32
    return %c0_i32, %c0_i32_0, %c0_i32_1 : i32, i32, i32
  }
  func.func @transform_20(%arg0: i32) -> (i32, i32, i32) {
    %c0_i32 = arith.constant 0 : i32
    %c0_i32_0 = arith.constant 0 : i32
    %c0_i32_1 = arith.constant 0 : i32
    %c0_i32_2 = arith.constant 0 : i32
    return %c0_i32, %c0_i32_0, %c0_i32_1 : i32, i32, i32
  }
  func.func @transform_21(%arg0: i32) -> (i32, i32, i32) {
    %c0_i32 = arith.constant 0 : i32
    %c0_i32_0 = arith.constant 0 : i32
    %c0_i32_1 = arith.constant 0 : i32
    %c0_i32_2 = arith.constant 0 : i32
    return %c0_i32, %c0_i32_0, %c0_i32_1 : i32, i32, i32
  }
  func.func @transform_22(%arg0: i32) -> (i32, i32) {
    %c0_i32 = arith.constant 0 : i32
    %c0_i32_0 = arith.constant 0 : i32
    %c0_i32_1 = arith.constant 0 : i32
    return %c0_i32, %c0_i32_0 : i32, i32
  }
  func.func @transform_23(%arg0: i32) -> (i32, i32) {
    %c0_i32 = arith.constant 0 : i32
    %c0_i32_0 = arith.constant 0 : i32
    return %arg0, %c0_i32 : i32, i32
  }
}

</mosaic_0001>

<bundles_post_ra>
// kernel: afnonet_forward.1
= control target key start
LH: loop header
LB: loop body
LE: loop exit
PB: predicated region body
PF: predicated region fallthrough
CT: control target
= control target key end

     0   :  { %s5214_s0 = inlined_call_operand.vmem [shape: f32[32,128], index: 0, kind: input, shape index: {}]   ;;  %s5215_s1 = inlined_call_operand.vmem [shape: f32[128,64], index: 1, kind: input, shape index: {}]   ;;  %s5216_s2 = inlined_call_operand.vmem [shape: f32[16,64], index: 2, kind: input, shape index: {}]   ;;  %s5217_s3 = inlined_call_operand.vmem [shape: f32[16,16], index: 3, kind: input, shape index: {}]   ;;  %s5218_s4 = inlined_call_operand.vmem [shape: f32[16,16], index: 4, kind: input, shape index: {}]   ;;  %s5219_s5 = inlined_call_operand.vmem [shape: f32[16,16], index: 5, kind: input, shape index: {}]   ;;  %s5220_s6 = inlined_call_operand.vmem [shape: f32[16,16], index: 6, kind: input, shape index: {}]   ;;  %s5221_s7 = inlined_call_operand.vmem [shape: f32[2,1,64], index: 7, kind: input, shape index: {}]   ;;  %s5222_s8 = inlined_call_operand.vmem [shape: f32[2,1,64], index: 8, kind: input, shape index: {}]   ;;  %s5223_s9 = inlined_call_operand.vmem [shape: f32[2,64,128], index: 9, kind: input, shape index: {}]   ;;  %s5224_s10 = inlined_call_operand.vmem [shape: f32[2,64,128], index: 10, kind: input, shape index: {}]   ;;  %s5225_s11 = inlined_call_operand.vmem [shape: f32[2,1,128], index: 11, kind: input, shape index: {}]   ;;  %s5226_s12 = inlined_call_operand.vmem [shape: f32[2,128,64], index: 12, kind: input, shape index: {}]   ;;  %s5227_s13 = inlined_call_operand.vmem [shape: f32[2,128,64], index: 13, kind: input, shape index: {}]   ;;  %s5228_s14 = inlined_call_operand.vmem [shape: f32[2,1,64], index: 14, kind: input, shape index: {}]   ;;  %s5229_s15 = inlined_call_operand.vmem [shape: f32[2,1,64], index: 15, kind: input, shape index: {}]   ;;  %s5230_s16 = inlined_call_operand.vmem [shape: f32[2,1,64], index: 16, kind: input, shape index: {}]   ;;  %s5231_s17 = inlined_call_operand.vmem [shape: f32[2,1,64], index: 17, kind: input, shape index: {}]   ;;  %s5232_s18 = inlined_call_operand.vmem [shape: f32[2,64,128], index: 18, kind: input, shape index: {}]   ;;  %s5233_s19 = inlined_call_operand.vmem [shape: f32[2,1,128], index: 19, kind: input, shape index: {}]   ;;  %s5234_s20 = inlined_call_operand.vmem [shape: f32[2,128,64], index: 20, kind: input, shape index: {}]   ;;  %s5235_s21 = inlined_call_operand.vmem [shape: f32[2,1,64], index: 21, kind: input, shape index: {}]   ;;  %s5236_s22 = inlined_call_operand.vmem [shape: f32[64,128], index: 22, kind: input, shape index: {}]   ;;  %s5237_s23 = inlined_call_operand.vmem [shape: f32[32,128], index: 23, kind: output, shape index: {}]  }
   0x1   :  { %5250 = sst [smem:[#allocation2_spill]] %s5214_s0 }
   0x2   :  { %5251 = sst [smem:[#allocation3_spill]] %s5215_s1 }
   0x3   :  { %5252 = sst [smem:[#allocation4_spill]] %s5216_s2 }
   0x4   :  { %5253 = sst [smem:[#allocation5_spill]] %s5217_s3 }
   0x5   :  { %5254 = sst [smem:[#allocation6_spill]] %s5218_s4  ;;  %s4464_s4 = smov 0  }
   0x6   :  { %5255 = sst [smem:[#allocation7_spill]] %s5219_s5 }
   0x7   :  { %5256 = sst [smem:[#allocation8_spill]] %s5220_s6 }
   0x8   :  { %5257 = sst [smem:[#allocation9_spill]] %s5221_s7 }
   0x9 LB: > { %s3108_s30 = sadd.s32 4294967295, %s4341_s4   ;;  %p3112_p0 = scmp.ge.s32.totalorder %s4341_s4, 1  ;;  %s4341_s4 = sphi %s4464_s4, %s33_s4  }
   0xa   : > { %p638_p1 = scmp.lt.s32.totalorder %s4341_s4, 3 }
   0xc   : > { %p639_p2 = pnand %p3112_p0, %p638_p1 }
   0xd   : > { %s5258_s5 = sld [smem:[#allocation3_spill]] (!%p639_p2)  ;;  %s3113_s27 = sshll.u32 (!%p639_p2), %s3108_s30, 1  ;;  %vm819_vm0 = vcmask (!%p639_p2), 523264   ;;  %vm863_vm1 = vcmask (!%p639_p2), 130048   ;;  %v3118_v57 = vld [vmem:[%s5222_s8] ss:$0 sm:$0xff] (!%p639_p2) }
   0xe   : > { %642 = sbr.rel (%p639_p2) target bundleno = 4520 (0x11a8), region = 112  ;;  %p703_p3 = scmp.lt.s32.totalorder (!%p639_p2), %s3113_s27, 3  ;;  %v1034_v62 = vld [vmem:[%s5224_s10] sm:$0xff] (!%p639_p2)  ;;  %v1035_v63 = vld [vmem:[%s5224_s10 + $0x8] sm:$0xff] (!%p639_p2) }
   0xf   : > { %s5259_s28 = sld [smem:[#allocation2_spill]] (!%p639_p2)  ;;  %s5260_s7 = sld [smem:[#allocation4_spill]] (!%p639_p2) }
  0x10   : > { %s5261_s24 = sld [smem:[#allocation5_spill]] (!%p639_p2)  ;;  %s5262_s26 = sld [smem:[#allocation9_spill]] (!%p639_p2) }
  0x11   : > { %s5264_s3 = sld [smem:[#allocation8_spill]] (!%p639_p2) }
  0x13   : > { %v716_v0 = vld [vmem:[%s5258_s5] sm:$0xff] (!%p639_p2)  ;;  %v717_v1 = vld [vmem:[%s5258_s5 + $0x8] sm:$0xff] (!%p639_p2)  ;;  %v718_v2 = vld [vmem:[%s5258_s5 + $0x10] sm:$0xff] (!%p639_p2) }
  0x14   : > { %v3918_v3 = vpack.c.bf16 (!%p639_p2), %v717_v1, %v716_v0  ;;  %v719_v4 = vld [vmem:[%s5258_s5 + $0x18] sm:$0xff] (!%p639_p2)  ;;  %v720_v6 = vld [vmem:[%s5258_s5 + $0x20] sm:$0xff] (!%p639_p2)  ;;  %v721_v7 = vld [vmem:[%s5258_s5 + $0x28] sm:$0xff] (!%p639_p2) }
  0x15   : > { %v3922_v5 = vpack.c.bf16 %v719_v4, %v718_v2  ;;  %s5268_s27 = smov (!%p703_p3, %s3113_s27), 3  ;;  %v3926_v8 = vpack.c.bf16 %v721_v7, %v720_v6  ;;  %v722_v9 = vld [vmem:[%s5258_s5 + $0x30] sm:$0xff]  ;;  %v723_v10 = vld [vmem:[%s5258_s5 + $0x38] sm:$0xff]  ;;  %v724_v13 = vld [vmem:[%s5258_s5 + $0x40] sm:$0xff]  ;;  %v3958_v2 = vpack.c.bf16 %v1035_v63, %v1034_v62 }
  0x16   : > { %3919 = vmatprep.subr.bf16.mxu0 %v3918_v3  ;;  %s5245_s30 = sshll.u32 %s5268_s27, 3  ;;  %v3930_v12 = vpack.c.bf16 %v723_v10, %v722_v9  ;;  %v725_v14 = vld [vmem:[%s5258_s5 + $0x48] sm:$0xff]  ;;  %v726_v16 = vld [vmem:[%s5258_s5 + $0x50] sm:$0xff]  ;;  %v727_v17 = vld [vmem:[%s5258_s5 + $0x58] sm:$0xff]  ;;  %s5266_s6 = sshll.u32 %s5268_s27, 3 }
  0x17   : > { %3921 = vmatpush3.bf16.msra.mxu0 %v3918_v3  ;;  %s706_s29 = scalar_lea.vmem %s5259_s28, %s5245_s30  ;;  %v3934_v15 = vpack.c.bf16 %v725_v14, %v724_v13  ;;  %v3938_v18 = vpack.c.bf16 %v727_v17, %v726_v16  ;;  %v728_v19 = vld [vmem:[%s5258_s5 + $0x60] sm:$0xff]  ;;  %v729_v20 = vld [vmem:[%s5258_s5 + $0x68] sm:$0xff]  ;;  %v730_v22 = vld [vmem:[%s5258_s5 + $0x70] sm:$0xff]  ;;  %s5263_s30 = sld [smem:[#allocation6_spill]] }
  0x18   : > { %3923 = vmatprep.subr.bf16.mxu0 %v3922_v5  ;;  %v714_v11 = vld [vmem:[%s706_s29] sm:$0xff]  ;;  %v3942_v21 = vpack.c.bf16 %v729_v20, %v728_v19  ;;  %v731_v23 = vld [vmem:[%s5258_s5 + $0x78] sm:$0xff]  ;;  %v715_v25 = vld [vmem:[%s706_s29 + $0x8] sm:$0xff]  ;;  %s5265_s5 = sld [smem:[#allocation7_spill]] }
  0x19   : > { %3516 = vmatprep.mubr.f32.mxu0 %v714_v11  ;;  %v3946_v24 = vpack.c.bf16 %v731_v23, %v730_v22  ;;  %v732_v26 = vld [vmem:[%s5260_s7] sm:$0xff]  ;;  %v733_v28 = vld [vmem:[%s5260_s7 + $0x8] sm:$0xff]  ;;  %v1036_v3 = vld [vmem:[%s5224_s10 + $0x10] sm:$0xff] }
  0x1a   : > { %v4549_v44 = vld [vmem:[%s5261_s24] sm:$0xff]  ;;  %v4574_v0 = vld [vmem:[%s5261_s24 + $0x8] sm:$0xff]  ;;  %v1037_v4 = vld [vmem:[%s5224_s10 + $0x18] sm:$0xff] }
  0x1b   : > { %3925 = vmatpush3.bf16.msra.mxu0 %v3922_v5  ;;  %3523 = vmatprep.mubr.msk.f32.mxu1 %vm863_vm1, %v4549_v44  ;;  %v3117_v53 = vld [vmem:[%s5262_s26] ss:$0 sm:$0xff]  ;;  %v3962_v6 = vpack.c.bf16 %v1037_v4, %v1036_v3  ;;  %v1040_v10 = vld [vmem:[%s5224_s10 + $0x30] sm:$0xff]  ;;  %v1041_v11 = vld [vmem:[%s5224_s10 + $0x38] sm:$0xff] }
  0x1c   : > { %3927 = vmatprep.subr.bf16.mxu0 %v3926_v8  ;;  %v1038_v7 = vld [vmem:[%s5224_s10 + $0x20] sm:$0xff]  ;;  %v1027_v14 = vld [vmem:[%s5223_s9 + $0x8] sm:$0xff]  ;;  %v1217_v19 = vld [vmem:[%s5226_s12 + $0x10] sm:$0xff] }
  0x1d   : > { %v4579_v1 = vld [vmem:[%s5263_s30] sm:$0xff]  ;;  %v4594_v5 = vld [vmem:[%s5263_s30 + $0x8] sm:$0xff]  ;;  %v1218_v20 = vld [vmem:[%s5226_s12 + $0x18] sm:$0xff] }
  0x1e   : > { %v1026_v13 = vld [vmem:[%s5223_s9] sm:$0xff]  ;;  %v1216_v17 = vld [vmem:[%s5226_s12 + $0x8] sm:$0xff]  ;;  %v1332_v3 = vld [vmem:[%s5227_s13 + $0x38] sm:$0xff] }
  0x1f   : > { %3929 = vmatpush3.bf16.msra.mxu0 %v3926_v8  ;;  %v1039_v8 = vld [vmem:[%s5224_s10 + $0x28] sm:$0xff]  ;;  %v1215_v16 = vld [vmem:[%s5226_s12] sm:$0xff] }
  0x20   : > { %3931 = vmatprep.subr.bf16.mxu0 %v3930_v12  ;;  %v3966_v9 = vpack.c.bf16 %v1039_v8, %v1038_v7  ;;  %v1219_v22 = vld [vmem:[%s5226_s12 + $0x20] sm:$0xff]  ;;  %v1220_v23 = vld [vmem:[%s5226_s12 + $0x28] sm:$0xff] }
  0x21   : > { %v1330_v62 = vld [vmem:[%s5227_s13 + $0x28] sm:$0xff] }
  0x22   : > { %v1334_v7 = vld [vmem:[%s5227_s13 + $0x48] sm:$0xff] }
  0x23   : > { %3933 = vmatpush3.bf16.msra.mxu0 %v3930_v12  ;;  %v3970_v12 = vpack.c.bf16 %v1041_v11, %v1040_v10  ;;  %v1336_v10 = vld [vmem:[%s5227_s13 + $0x58] sm:$0xff] }
  0x24   : > { %3935 = vmatprep.subr.bf16.mxu0 %v3934_v15 }
  0x27   : > { %3937 = vmatpush3.bf16.msra.mxu0 %v3934_v15  ;;  %v3974_v15 = vpack.c.bf16 %v1027_v14, %v1026_v13  ;;  %v1338_v13 = vld [vmem:[%s5227_s13 + $0x68] sm:$0xff] }
  0x28   : > { %3939 = vmatprep.subr.bf16.mxu0 %v3938_v18 }
  0x2b   : > { %3941 = vmatpush3.bf16.msra.mxu0 %v3938_v18  ;;  %v3990_v18 = vpack.c.bf16 %v1216_v17, %v1215_v16  ;;  %v1230_v16 = vld [vmem:[%s5226_s12 + $0x78] sm:$0xff] }
  0x2c   : > { %3943 = vmatprep.subr.bf16.mxu0 %v3942_v21 }
  0x2f   : > { %3945 = vmatpush3.bf16.msra.mxu0 %v3942_v21  ;;  %v3994_v21 = vpack.c.bf16 %v1218_v20, %v1217_v19  ;;  %v1340_v19 = vld [vmem:[%s5227_s13 + $0x78] sm:$0xff] }
  0x30   : > { %3947 = vmatprep.subr.bf16.mxu0 %v3946_v24 }
  0x33   : > { %3949 = vmatpush3.bf16.msra.mxu0 %v3946_v24  ;;  %v3998_v24 = vpack.c.bf16 %v1220_v23, %v1219_v22 }
  0x34   : > { %3991 = vmatprep.subr.bf16.mxu0 %v3990_v18 }
  0x36   : > { %3517 = vmatmul.mubr.f32.vlgmr.msra.gmra.mrb[0].mxu0 %v715_v25  ;;  %v1221_v25 = vld [vmem:[%s5226_s12 + $0x30] sm:$0xff] }
  0x37   : > { %3993 = vmatpush3.bf16.msra.mxu0 %v3990_v18  ;;  %v1339_v18 = vld [vmem:[%s5227_s13 + $0x70] sm:$0xff] }
  0x38   : > { %3995 = vmatprep.subr.bf16.mxu0 %v3994_v21  ;;  %v4050_v20 = vpack.c.bf16 %v1340_v19, %v1339_v18  ;;  %v1645_v18 = vld [vmem:[%s5232_s18] sm:$0xff]  ;;  %v1646_v19 = vld [vmem:[%s5232_s18 + $0x8] sm:$0xff] }
  0x3b   : > { %3997 = vmatpush3.bf16.msra.mxu0 %v3994_v21  ;;  %v3127_v21 = vld [vmem:[%s5225_s11] ss:$0 sm:$0xff] }
  0x3c   : > { %3999 = vmatprep.subr.bf16.mxu0 %v3998_v24 }
  0x3f   : > { %4001 = vmatpush3.bf16.msra.mxu0 %v3998_v24 }
 0x109   : > { %v3518_v27 = vpop.f32.mrb[0].mxu0 }
 0x10a   : > { %v800_v29 = vpop.f32.mrb[1].mxu0  ;;  %v4536_v31 = vadd.f32 %v3518_v27, %v733_v28  ;;  %v1223_v28 = vld [vmem:[%s5226_s12 + $0x40] sm:$0xff] }
 0x10b   : > { %v4534_v30 = vadd.f32 %v800_v29, %v732_v26  ;;  %v1222_v26 = vld [vmem:[%s5226_s12 + $0x38] sm:$0xff]  ;;  %v1224_v29 = vld [vmem:[%s5226_s12 + $0x48] sm:$0xff] }
 0x10c   : > { %v823_v33 = vsel %vm819_vm0, %v4536_v31, 0.0  ;;  %v4002_v27 = vpack.c.bf16 %v1222_v26, %v1221_v25 }
 0x10d   : > { %v820_v32 = vsel %vm819_vm0, %v4534_v30, 0.0 }
 0x10e   : > { %821 = vadd.xlane.f32.xlu0 %v820_v32  ;;  %4003 = vmatprep.subr.bf16.mxu0 %v4002_v27  ;;  %v4006_v32 = vpack.c.bf16 %v1224_v29, %v1223_v28  ;;  %v4740_v28 = vld [vmem:[%s5264_s3] sm:$0xff] }
 0x10f   : > { %4005 = vmatpush3.bf16.msra.mxu0 %v4002_v27  ;;  %v3128_v29 = vld [vmem:[%s5228_s14] ss:$0 sm:$0xff] }
 0x110   : > { %4007 = vmatprep.subr.bf16.mxu0 %v4006_v32 }
 0x112   : > { %824 = vadd.xlane.f32.xlu0 %v823_v33  ;;  %v1225_v33 = vld [vmem:[%s5226_s12 + $0x50] sm:$0xff] }
 0x113   : > { %4009 = vmatpush3.bf16.msra.mxu0 %v4006_v32  ;;  %v3131_v32 = vld [vmem:[%s5229_s15] ss:$0 sm:$0xff] }
 0x19b   : > { %v822_v34 = vpop.xlane.xlu0 %821 }
 0x19c   : > { %v827_v35 = vmul.f32 0.015625, %v822_v34  ;;  %v1226_v34 = vld [vmem:[%s5226_s12 + $0x58] sm:$0xff] }
 0x19e   : > { %v829_v36 = vsub.f32 %v4534_v30, %v827_v35  ;;  %v4010_v35 = vpack.c.bf16 %v1226_v34, %v1225_v33 }
 0x19f   : > { %v825_v37 = vpop.xlane.xlu0 %824 }
 0x1a0   : > { %v828_v38 = vmul.f32 0.015625, %v825_v37  ;;  %v831_v39 = vmul.f32 %v829_v36, %v829_v36  ;;  %4011 = vmatprep.subr.bf16.mxu0 %v4010_v35  ;;  %v1228_v37 = vld [vmem:[%s5226_s12 + $0x68] sm:$0xff] }
 0x1a1   : > { %4013 = vmatpush3.bf16.msra.mxu0 %v4010_v35 }
 0x1a2   : > { %v830_v40 = vsub.f32 %v4536_v31, %v828_v38  ;;  %v833_v41 = vsel %vm819_vm0, %v831_v39, 0.0 }
 0x1a3   : > { %834 = vadd.xlane.f32.xlu1 %v833_v41  ;;  %v1028_v41 = vld [vmem:[%s5223_s9 + $0x10] sm:$0xff] }
 0x1a4   : > { %v832_v42 = vmul.f32 %v830_v40, %v830_v40 }
 0x1a6   : > { %v836_v43 = vsel %vm819_vm0, %v832_v42, 0.0  ;;  %v1029_v42 = vld [vmem:[%s5223_s9 + $0x18] sm:$0xff] }
 0x1a7   : > { %837 = vadd.xlane.f32.xlu1 %v836_v43 }
 0x230   : > { %v835_v45 = vpop.xlane.xlu1 %834 }
 0x231   : > { %v839_v46 = vmul.f32 0.015625, %v835_v45 }
 0x233   : > { %v841_v47 = vadd.f32 1e-06, %v839_v46  ;;  %v3978_v46 = vpack.c.bf16 %v1029_v42, %v1028_v41 }
 0x234   : > { %v838_v48 = vpop.xlane.xlu1 %837 }
 0x235   : > { %4303 = vrsqrt.f32 %v841_v47  ;;  %v840_v49 = vmul.f32 0.015625, %v838_v48  ;;  %v1030_v47 = vld [vmem:[%s5223_s9 + $0x20] sm:$0xff]  ;;  %v1031_v48 = vld [vmem:[%s5223_s9 + $0x28] sm:$0xff] }
 0x237   : > { %v842_v50 = vadd.f32 1e-06, %v840_v49  ;;  %v3982_v49 = vpack.c.bf16 %v1031_v48, %v1030_v47 }
 0x239   : > { %4305 = vrsqrt.f32 %v842_v50  ;;  %v1032_v50 = vld [vmem:[%s5223_s9 + $0x30] sm:$0xff] }
 0x23f   : > { %v4304_v51 = vpop.eup %4303 }
 0x240   : > { %v845_v52 = vmul.f32 %v4304_v51, %v829_v36  ;;  %v1227_v36 = vld [vmem:[%s5226_s12 + $0x60] sm:$0xff]  ;;  %v1033_v51 = vld [vmem:[%s5223_s9 + $0x38] sm:$0xff] }
 0x241   : > { %v4014_v38 = vpack.c.bf16 %v1228_v37, %v1227_v36 }
 0x242   : > { %v853_v56 = vmul.f32 %v3117_v53, %v845_v52  ;;  %v3986_v52 = vpack.c.bf16 %v1033_v51, %v1032_v50 }
 0x243   : > { %v4306_v54 = vpop.eup %4305  ;;  %4015 = vmatprep.subr.bf16.mxu0 %v4014_v38 }
 0x244   : > { %v846_v55 = vmul.f32 %v4306_v54, %v830_v40  ;;  %v4559_v59 = vadd.f32 %v3118_v57, %v853_v56  ;;  %4017 = vmatpush3.bf16.msra.mxu0 %v4014_v38  ;;  %v1326_v54 = vld [vmem:[%s5227_s13 + $0x8] sm:$0xff]  ;;  %v1327_v56 = vld [vmem:[%s5227_s13 + $0x10] sm:$0xff] }
 0x246   : > { %v854_v58 = vmul.f32 %v3117_v53, %v846_v55  ;;  %v1325_v53 = vld [vmem:[%s5227_s13] sm:$0xff] }
 0x247   : > { %v4022_v55 = vpack.c.bf16 %v1326_v54, %v1325_v53 }
 0x248   : > { %v4561_v60 = vadd.f32 %v3118_v57, %v854_v58  ;;  %v1328_v57 = vld [vmem:[%s5227_s13 + $0x18] sm:$0xff] }
 0x249   : > { %v4026_v58 = vpack.c.bf16 %v1328_v57, %v1327_v56 }
 0x24a   : > { %v3950_v61 = vpack.c.bf16 %v4561_v60, %v4559_v59 }
 0x24c   : > { %3951 = vmatprep.subr.bf16.mxu1 %v3950_v61 }
 0x24d   : > { %3953 = vmatpush3.bf16.msra.mxu1 %v3950_v61 }
 0x24e   : > { %3955 = vmatprep.subr.bf16.mxu1 %v3950_v61 }
 0x250   : > { %3524 = vmatmul.mubr.msk.f32.vlgmr.msra.gmra.mrb[0].mxu1 %vm863_vm1, %v4574_v0 }
 0x251   : > { %3957 = vmatpush3.bf16.msra.mxu1 %v3950_v61  ;;  %3530 = vmatprep.mubr.msk.f32.mxu1 %vm863_vm1, %v4579_v1  ;;  %v1329_v61 = vld [vmem:[%s5227_s13 + $0x20] sm:$0xff] }
 0x252   : > { %3959 = vmatprep.subr.bf16.mxu1 %v3958_v2  ;;  %v4030_v63 = vpack.c.bf16 %v1330_v62, %v1329_v61  ;;  %v4753_v62 = vld [vmem:[%s5264_s3 + $0x8] sm:$0xff] }
 0x254   : > { %3531 = vmatmul.mubr.msk.f32.vlgmr.msra.gmra.mrb[2].mxu1 %vm863_vm1, %v4594_v5 }
 0x255   : > { %3961 = vmatpush3.bf16.msra.mxu1 %v3958_v2  ;;  %v1331_v2 = vld [vmem:[%s5227_s13 + $0x30] sm:$0xff] }
 0x256   : > { %3963 = vmatprep.subr.bf16.mxu1 %v3962_v6  ;;  %v4034_v4 = vpack.c.bf16 %v1332_v3, %v1331_v2  ;;  %v4767_v2 = vld [vmem:[%s5265_s5 + $0x8] sm:$0xff] }
 0x259   : > { %3965 = vmatpush3.bf16.msra.mxu1 %v3962_v6  ;;  %v1333_v6 = vld [vmem:[%s5227_s13 + $0x40] sm:$0xff] }
 0x25a   : > { %3967 = vmatprep.subr.bf16.mxu1 %v3966_v9  ;;  %v4038_v8 = vpack.c.bf16 %v1334_v7, %v1333_v6 }
 0x25d   : > { %3969 = vmatpush3.bf16.msra.mxu1 %v3966_v9  ;;  %v1335_v9 = vld [vmem:[%s5227_s13 + $0x50] sm:$0xff] }
 0x25e   : > { %3971 = vmatprep.subr.bf16.mxu1 %v3970_v12  ;;  %v4042_v11 = vpack.c.bf16 %v1336_v10, %v1335_v9 }
 0x261   : > { %3973 = vmatpush3.bf16.msra.mxu1 %v3970_v12  ;;  %v1337_v12 = vld [vmem:[%s5227_s13 + $0x60] sm:$0xff] }
 0x262   : > { %3975 = vmatprep.subr.bf16.mxu1 %v3974_v15  ;;  %v4046_v14 = vpack.c.bf16 %v1338_v13, %v1337_v12 }
 0x323   : > { %v3525_v39 = vpop.f32.mrb[0].mxu1 }
 0x324   : > { %v936_v40 = vpop.f32.mrb[1].mxu1 }
 0x327   : > { %v3532_v43 = vpop.f32.mrb[2].mxu1 }
 0x328   : > { %v1017_v45 = vpop.f32.mrb[3].mxu1 }
 0x329   : > { %3549 = vmatprep.mubr.msk.f32.mxu1 %vm819_vm0, %v1017_v45 }
 0x32a   : > { %3550 = vmatmul.mubr.msk.f32.vlgmr.msra.gmra.mrb[4].mxu1 %vm819_vm0, %v3532_v43 }
 0x32b   : > { %3977 = vmatpush3.bf16.msra.mxu1 %v3974_v15  ;;  %3568 = vmatprep.mubr.msk.f32.mxu1 %vm819_vm0, %v936_v40  ;;  %v1229_v15 = vld [vmem:[%s5226_s12 + $0x70] sm:$0xff] }
 0x32c   : > { %3979 = vmatprep.subr.bf16.mxu1 %v3978_v46  ;;  %v4018_v17 = vpack.c.bf16 %v1230_v16, %v1229_v15 }
 0x32e   : > { %4019 = vmatprep.subr.bf16.mxu0 %v4018_v17 }
 0x32f   : > { %3981 = vmatpush3.bf16.msra.mxu1 %v3978_v46  ;;  %4021 = vmatpush3.bf16.msra.mxu0 %v4018_v17 }
 0x330   : > { %3983 = vmatprep.subr.bf16.mxu1 %v3982_v49 }
 0x333   : > { %3985 = vmatpush3.bf16.msra.mxu1 %v3982_v49 }
 0x334   : > { %3987 = vmatprep.subr.bf16.mxu1 %v3986_v52 }
 0x337   : > { %3989 = vmatpush3.bf16.msra.mxu1 %v3986_v52 }
 0x338   : > { %4023 = vmatprep.subr.bf16.mxu1 %v4022_v55 }
 0x33a   : > { %3569 = vmatmul.mubr.msk.f32.vlgmr.msra.gmra.mrb[4].mxu1 %vm819_vm0, %v3525_v39 }
 0x33b   : > { %4025 = vmatpush3.bf16.msra.mxu1 %v4022_v55 }
 0x33c   : > { %4027 = vmatprep.subr.bf16.mxu1 %v4026_v58 }
 0x33f   : > { %4029 = vmatpush3.bf16.msra.mxu1 %v4026_v58 }
 0x340   : > { %4031 = vmatprep.subr.bf16.mxu1 %v4030_v63 }
 0x343   : > { %4033 = vmatpush3.bf16.msra.mxu1 %v4030_v63  ;;  %v4758_v63 = vld [vmem:[%s5265_s5] sm:$0xff]  ;;  %s712_s5 = scalar_lea.vmem %s5237_s23, %s5266_s6 }
 0x344   : > { %4035 = vmatprep.subr.bf16.mxu1 %v4034_v4 }
 0x347   : > { %4037 = vmatpush3.bf16.msra.mxu1 %v4034_v4 }
 0x348   : > { %4039 = vmatprep.subr.bf16.mxu1 %v4038_v8 }
 0x34b   : > { %4041 = vmatpush3.bf16.msra.mxu1 %v4038_v8 }
 0x34c   : > { %4043 = vmatprep.subr.bf16.mxu1 %v4042_v11 }
 0x34f   : > { %4045 = vmatpush3.bf16.msra.mxu1 %v4042_v11 }
 0x350   : > { %4047 = vmatprep.subr.bf16.mxu1 %v4046_v14 }
 0x353   : > { %4049 = vmatpush3.bf16.msra.mxu1 %v4046_v14 }
 0x354   : > { %4051 = vmatprep.subr.bf16.mxu1 %v4050_v20 }
 0x357   : > { %4053 = vmatpush3.bf16.msra.mxu1 %v4050_v20  ;;  %v4062_v20 = vpack.c.bf16 %v1646_v19, %v1645_v18 }
 0x359   : > { %4063 = vmatprep.subr.bf16.mxu0 %v4062_v20 }
 0x40d   : > { %v3570_v22 = vpop.f32.mrb[4].mxu1 }
 0x40e   : > { %v1212_v23 = vadd.f32 %v3570_v22, %v3127_v21  ;;  %v1195_v24 = vpop.f32.mrb[5].mxu1  ;;  %v1648_v22 = vld [vmem:[%s5232_s18 + $0x18] sm:$0xff] }
 0x40f   : > { %v1211_v25 = vadd.f32 %v3127_v21, %v1195_v24  ;;  %v1647_v21 = vld [vmem:[%s5232_s18 + $0x10] sm:$0xff]  ;;  %v1649_v24 = vld [vmem:[%s5232_s18 + $0x20] sm:$0xff] }
 0x410   : > { %v1214_v27 = vmax.f32 %v1212_v23, 0.0  ;;  %v4066_v23 = vpack.c.bf16 %v1648_v22, %v1647_v21 }
 0x411   : > { %v1213_v26 = vmax.f32 %v1211_v25, 0.0  ;;  %v1650_v25 = vld [vmem:[%s5232_s18 + $0x28] sm:$0xff] }
 0x413   : > { %3603 = vmatprep.mubr.f32.mxu0 %v1213_v26  ;;  %3638 = vmatprep.mubr.f32.mxu1 %v1213_v26  ;;  %v1651_v26 = vld [vmem:[%s5232_s18 + $0x30] sm:$0xff] }
 0x414   : > { %3604 = vmatmul.mubr.f32.vlgmr.msra.gmra.mrb[2].mxu0 %v1214_v27  ;;  %3639 = vmatmul.mubr.f32.vlgmr.msra.gmra.mrb[6].mxu1 %v1214_v27  ;;  %v4070_v27 = vpack.c.bf16 %v1650_v25, %v1649_v24 }
 0x415   : > { %3645 = vmatprep.mubr.msk.f32.mxu1 %vm863_vm1, %v4740_v28  ;;  %4065 = vmatpush3.bf16.msra.mxu0 %v4062_v20 }
 0x416   : > { %4067 = vmatprep.subr.bf16.mxu0 %v4066_v23 }
 0x419   : > { %4069 = vmatpush3.bf16.msra.mxu0 %v4066_v23 }
 0x41a   : > { %4071 = vmatprep.subr.bf16.mxu0 %v4070_v27 }
 0x41d   : > { %4073 = vmatpush3.bf16.msra.mxu0 %v4070_v27 }
 0x4e7   : > { %v3605_v33 = vpop.f32.mrb[2].mxu0  ;;  %v3640_v34 = vpop.f32.mrb[6].mxu1 }
 0x4e8   : > { %v1310_v35 = vadd.f32 %v3605_v33, %v3128_v29  ;;  %v1420_v36 = vadd.f32 %v3640_v34, %v3131_v32  ;;  %v1304_v37 = vpop.f32.mrb[3].mxu0  ;;  %v1414_v38 = vpop.f32.mrb[7].mxu1 }
 0x4e9   : > { %v1305_v39 = vadd.f32 %v3128_v29, %v1304_v37  ;;  %v1415_v40 = vadd.f32 %v3131_v32, %v1414_v38  ;;  %v1652_v29 = vld [vmem:[%s5232_s18 + $0x38] sm:$0xff] }
 0x4ea   : > { %v3130_v41 = vadd.f32 -0.01, %v1310_v35  ;;  %v1320_v42 = vadd.f32 0.01, %v1310_v35  ;;  %v3133_v43 = vadd.f32 -0.01, %v1420_v36  ;;  %v4074_v32 = vpack.c.bf16 %v1652_v29, %v1651_v26 }
 0x4eb   : > { %v1430_v45 = vadd.f32 0.01, %v1420_v36  ;;  %v3129_v46 = vadd.f32 -0.01, %v1305_v39  ;;  %v1319_v47 = vadd.f32 0.01, %v1305_v39 }
 0x4ec   : > { %v3132_v48 = vadd.f32 -0.01, %v1415_v40  ;;  %v1429_v49 = vadd.f32 0.01, %v1415_v40  ;;  %vm1423_vm2 = vcmp.gt.f32.partialorder %v1415_v40, 0.01  ;;  %4075 = vmatprep.subr.bf16.mxu0 %v4074_v32 }
 0x4ed   : > { %vm1427_vm3 = vcmp.lt.f32.partialorder %v1415_v40, -0.01  ;;  %vm1428_vm4 = vcmp.lt.f32.partialorder %v1420_v36, -0.01  ;;  %vm1424_vm5 = vcmp.gt.f32.partialorder %v1420_v36, 0.01  ;;  %4077 = vmatpush3.bf16.msra.mxu0 %v4074_v32 }
 0x4ee   : > { %v1431_v50 = vsel %vm1427_vm3, %v1429_v49, 0.0  ;;  %v1432_v51 = vsel %vm1428_vm4, %v1430_v45, 0.0  ;;  %vm1313_vm6 = vcmp.gt.f32.partialorder %v1305_v39, 0.01  ;;  %vm1317_vm7 = vcmp.lt.f32.partialorder %v1305_v39, -0.01 }
 0x4ef   : > { %v1433_v52 = vsel %vm1423_vm2, %v3132_v48, %v1431_v50  ;;  %v1434_v53 = vsel %vm1424_vm5, %v3133_v43, %v1432_v51  ;;  %vm1318_vm8 = vcmp.lt.f32.partialorder %v1310_v35, -0.01  ;;  %vm1314_vm9 = vcmp.gt.f32.partialorder %v1310_v35, 0.01  ;;  %v3138_v40 = vld [vmem:[%s5230_s16] ss:$0 sm:$0xff] }
 0x4f0   : > { %v4054_v54 = vpack.c.bf16 %v1434_v53, %v1433_v52  ;;  %v1321_v55 = vsel %vm1317_vm7, %v1319_v47, 0.0  ;;  %v1322_v56 = vsel %vm1318_vm8, %v1320_v42, 0.0  ;;  %v3139_v45 = vld [vmem:[%s5231_s17] ss:$0 sm:$0xff]  ;;  %v1796_v51 = vld [vmem:[%s5234_s20 + $0x8] sm:$0xff]  ;;  %v1797_v53 = vld [vmem:[%s5234_s20 + $0x10] sm:$0xff] }
 0x4f1   : > { %v1323_v57 = vsel %vm1313_vm6, %v3129_v46, %v1321_v55  ;;  %v1324_v58 = vsel %vm1314_vm9, %v3130_v41, %v1322_v56  ;;  %v1795_v50 = vld [vmem:[%s5234_s20] sm:$0xff]  ;;  %v1800_v56 = vld [vmem:[%s5234_s20 + $0x28] sm:$0xff] }
 0x4f2   : > { %4055 = vmatprep.subr.bf16.mxu1 %v4054_v54  ;;  %v4058_v61 = vpack.c.bf16 %v1324_v58, %v1323_v57  ;;  %v4078_v52 = vpack.c.bf16 %v1796_v51, %v1795_v50  ;;  %v1799_v55 = vld [vmem:[%s5234_s20 + $0x20] sm:$0xff]  ;;  %v1801_v58 = vld [vmem:[%s5234_s20 + $0x30] sm:$0xff] }
 0x4f3   : > { %4057 = vmatpush3.bf16.msra.mxu1 %v4054_v54  ;;  %v1798_v54 = vld [vmem:[%s5234_s20 + $0x18] sm:$0xff]  ;;  %v4086_v57 = vpack.c.bf16 %v1800_v56, %v1799_v55 }
 0x4f4   : > { %4059 = vmatprep.subr.bf16.mxu1 %v4058_v61 }
 0x4f6   : > { %3646 = vmatmul.mubr.msk.f32.vlgmr.msra.gmra.mrb[8].mxu1 %vm863_vm1, %v4753_v62 }
 0x4f7   : > { %4061 = vmatpush3.bf16.msra.mxu1 %v4058_v61  ;;  %3652 = vmatprep.mubr.msk.f32.mxu1 %vm863_vm1, %v4758_v63  ;;  %v1802_v61 = vld [vmem:[%s5234_s20 + $0x38] sm:$0xff] }
 0x4f8   : > { %4079 = vmatprep.subr.bf16.mxu1 %v4078_v52 }
 0x4fe   : > { %3653 = vmatmul.mubr.msk.f32.vlgmr.msra.gmra.mrb[8].mxu1 %vm863_vm1, %v4767_v2 }
 0x4ff   : > { %4081 = vmatpush3.bf16.msra.mxu1 %v4078_v52 }
 0x5d1   : > { %v3654_v3 = vpop.f32.mrb[8].mxu1 }
 0x5d2   : > { %v1598_v4 = vadd.f32 %v3654_v3, %v4561_v60  ;;  %v1588_v6 = vpop.f32.mrb[9].mxu1  ;;  %v4090_v3 = vpack.c.bf16 %v1802_v61, %v1801_v58 }
 0x5d3   : > { %v1597_v7 = vadd.f32 %v1588_v6, %v4559_v59  ;;  %v1804_v6 = vld [vmem:[%s5234_s20 + $0x48] sm:$0xff] }
 0x5d4   : > { %v4774_v8 = vadd.f32 %v1598_v4, %v4536_v31  ;;  %v1803_v4 = vld [vmem:[%s5234_s20 + $0x40] sm:$0xff] }
 0x5d5   : > { %v4777_v9 = vadd.f32 %v1597_v7, %v4534_v30  ;;  %v4094_v7 = vpack.c.bf16 %v1804_v6, %v1803_v4  ;;  %v4343_v6 = vmov -1.0  }
 0x5d6   : > { %v1606_v10 = vsel %vm819_vm0, %v4774_v8, 0.0 }
 0x5d7   : > { %1607 = vadd.xlane.f32.xlu1 %v1606_v10  ;;  %v1603_v11 = vsel %vm819_vm0, %v4777_v9, 0.0  ;;  %v1805_v10 = vld [vmem:[%s5234_s20 + $0x50] sm:$0xff] }
 0x5d8   : > { %1604 = vadd.xlane.f32.xlu0 %v1603_v11  ;;  %v1806_v11 = vld [vmem:[%s5234_s20 + $0x58] sm:$0xff] }
 0x664   : > { %v1608_v12 = vpop.xlane.xlu1 %1607 }
 0x665   : > { %v1610_v13 = vmul.f32 0.015625, %v1608_v12  ;;  %v1605_v60 = vpop.xlane.xlu0 %1604  ;;  %v4098_v12 = vpack.c.bf16 %v1806_v11, %v1805_v10 }
 0x666   : > { %v1609_v14 = vmul.f32 0.015625, %v1605_v60  ;;  %v1808_v60 = vld [vmem:[%s5234_s20 + $0x68] sm:$0xff] }
 0x667   : > { %v1612_v59 = vsub.f32 %v4774_v8, %v1610_v13  ;;  %v1807_v13 = vld [vmem:[%s5234_s20 + $0x60] sm:$0xff] }
 0x668   : > { %v1611_v31 = vsub.f32 %v4777_v9, %v1609_v14  ;;  %v4102_v14 = vpack.c.bf16 %v1808_v60, %v1807_v13 }
 0x669   : > { %v1614_v15 = vmul.f32 %v1612_v59, %v1612_v59 }
 0x66a   : > { %v1613_v16 = vmul.f32 %v1611_v31, %v1611_v31 }
 0x66b   : > { %v1618_v30 = vsel %vm819_vm0, %v1614_v15, 0.0 }
 0x66c   : > { %1619 = vadd.xlane.f32.xlu1 %v1618_v30  ;;  %v1615_v17 = vsel %vm819_vm0, %v1613_v16, 0.0  ;;  %v3140_v16 = vld [vmem:[%s5233_s19] ss:$0 sm:$0xff] }
 0x66d   : > { %1616 = vadd.xlane.f32.xlu0 %v1615_v17 }
 0x6f9   : > { %v1620_v33 = vpop.xlane.xlu1 %1619 }
 0x6fa   : > { %v1622_v34 = vmul.f32 0.015625, %v1620_v33  ;;  %v1617_v35 = vpop.xlane.xlu0 %1616 }
 0x6fb   : > { %v1621_v36 = vmul.f32 0.015625, %v1617_v35 }
 0x6fc   : > { %v1624_v37 = vadd.f32 1e-06, %v1622_v34 }
 0x6fd   : > { %v1623_v38 = vadd.f32 1e-06, %v1621_v36 }
 0x6fe   : > { %4307 = vrsqrt.f32 %v1624_v37 }
 0x6ff   : > { %4309 = vrsqrt.f32 %v1623_v38 }
 0x708   : > { %v4308_v39 = vpop.eup %4307 }
 0x709   : > { %v4310_v41 = vpop.eup %4309  ;;  %v1628_v42 = vmul.f32 %v4308_v39, %v1612_v59  ;;  %v1809_v59 = vld [vmem:[%s5234_s20 + $0x70] sm:$0xff] }
 0x70a   : > { %v1627_v43 = vmul.f32 %v4310_v41, %v1611_v31  ;;  %v1810_v31 = vld [vmem:[%s5234_s20 + $0x78] sm:$0xff] }
 0x70b   : > { %v1636_v46 = vmul.f32 %v3138_v40, %v1628_v42  ;;  %v4106_v15 = vpack.c.bf16 %v1810_v31, %v1809_v59 }
 0x70c   : > { %v1635_v47 = vmul.f32 %v3138_v40, %v1627_v43 }
 0x70d   : > { %v1644_v49 = vadd.f32 %v3139_v45, %v1636_v46 }
 0x70e   : > { %v1643_v48 = vadd.f32 %v3139_v45, %v1635_v47 }
 0x710   : > { %3671 = vmatprep.mubr.msk.f32.mxu0 %vm819_vm0, %v1643_v48 }
 0x711   : > { %3672 = vmatmul.mubr.msk.f32.vlgmr.msra.gmra.mrb[4].mxu0 %vm819_vm0, %v1644_v49 }
 0x712   : > { %3713 = vmatprep.mubr.msk.f32.mxu0 %vm863_vm1, %v4549_v44  ;;  %v4082_v44 = vpack.c.bf16 %v1798_v54, %v1797_v53 }
 0x714   : > { %4083 = vmatprep.subr.bf16.mxu1 %v4082_v44 }
 0x715   : > { %4085 = vmatpush3.bf16.msra.mxu1 %v4082_v44 }
 0x716   : > { %4087 = vmatprep.subr.bf16.mxu1 %v4086_v57 }
 0x719   : > { %4089 = vmatpush3.bf16.msra.mxu1 %v4086_v57 }
 0x71a   : > { %4091 = vmatprep.subr.bf16.mxu1 %v4090_v3 }
 0x71d   : > { %4093 = vmatpush3.bf16.msra.mxu1 %v4090_v3 }
 0x71e   : > { %4095 = vmatprep.subr.bf16.mxu1 %v4094_v7 }
 0x721   : > { %4097 = vmatpush3.bf16.msra.mxu1 %v4094_v7 }
 0x722   : > { %4099 = vmatprep.subr.bf16.mxu1 %v4098_v12 }
 0x725   : > { %4101 = vmatpush3.bf16.msra.mxu1 %v4098_v12 }
 0x726   : > { %4103 = vmatprep.subr.bf16.mxu1 %v4102_v14 }
 0x729   : > { %4105 = vmatpush3.bf16.msra.mxu1 %v4102_v14 }
 0x72a   : > { %4107 = vmatprep.subr.bf16.mxu1 %v4106_v15 }
 0x72d   : > { %4109 = vmatpush3.bf16.msra.mxu1 %v4106_v15 }
 0x7e4   : > { %v3673_v30 = vpop.f32.mrb[4].mxu0 }
 0x7e5   : > { %v1738_v17 = vadd.f32 %v3673_v30, %v3140_v16  ;;  %v1732_v18 = vpop.f32.mrb[5].mxu0  ;;  %v3143_v30 = vld [vmem:[%s5235_s21] ss:$0 sm:$0xff] }
 0x7e6   : > { %v1733_v19 = vadd.f32 %v3140_v16, %v1732_v18 }
 0x7e7   : > { %v1744_v20 = vmul.f32 0.70710677, %v1738_v17  ;;  %v1742_v31 = vmul.f32 0.5, %v1738_v17 }
 0x7e8   : > { %v1743_v21 = vmul.f32 0.70710677, %v1733_v19  ;;  %v1741_v14 = vmul.f32 0.5, %v1733_v19 }
 0x7e9   : > { %v1750_v22 = vand.u32 2147483647, %v1744_v20  ;;  %vm1746_vm10 = vcmp.ge.f32.partialorder %v1744_v20, 0.0 }
 0x7ea   : > { %v1749_v23 = vand.u32 2147483647, %v1743_v21  ;;  %vm1745_vm11 = vcmp.ge.f32.partialorder %v1743_v21, 0.0  ;;  %v1748_v7 = vsel %vm1746_vm10, 1.0, %v4343_v6 }
 0x7eb   : > { %v1752_v24 = vmul.f32 0.3275911, %v1750_v22  ;;  %v1778_v29 = vsub.f32 0.0, %v1750_v22  ;;  %v1747_v12 = vsel %vm1745_vm11, 1.0, %v4343_v6 }
 0x7ec   : > { %v1751_v25 = vmul.f32 0.3275911, %v1749_v23  ;;  %v1777_v32 = vsub.f32 0.0, %v1749_v23 }
 0x7ed   : > { %v1754_v26 = vadd.f32 1.0, %v1752_v24  ;;  %v1780_v34 = vmul.f32 %v1778_v29, %v1750_v22 }
 0x7ee   : > { %v1753_v27 = vadd.f32 1.0, %v1751_v25  ;;  %v1779_v37 = vmul.f32 %v1777_v32, %v1749_v23 }
 0x7ef   : > { %4311 = vrcp.f32 %v1754_v26  ;;  %v1783_v40 = vmul.f32 1.442695, %v1780_v34 }
 0x7f0   : > { %4313 = vrcp.f32 %v1753_v27  ;;  %v1781_v43 = vmul.f32 1.442695, %v1779_v37 }
 0x7f1   : > { %4315 = vpow2.f32 %v1783_v40 }
 0x7f2   : > { %4317 = vpow2.f32 %v1781_v43  ;;  %v3146_v43 = vld [vmem:[%s5262_s26 + $0x1] ss:$0 sm:$0xff] }
 0x7f9   : > { %v4312_v33 = vpop.eup %4311 }
 0x7fa   : > { %v4314_v35 = vpop.eup %4313  ;;  %v1760_v36 = vmul.f32 1.0614054, %v4312_v33 }
 0x7fb   : > { %v1759_v38 = vmul.f32 1.0614054, %v4314_v35  ;;  %v4316_v56 = vpop.eup %4315 }
 0x7fc   : > { %v1762_v39 = vadd.f32 -1.4531521, %v1760_v36  ;;  %v4318_v58 = vpop.eup %4317 }
 0x7fd   : > { %v1761_v41 = vadd.f32 -1.4531521, %v1759_v38 }
 0x7fe   : > { %v1764_v42 = vmul.f32 %v4312_v33, %v1762_v39 }
 0x7ff   : > { %v1763_v45 = vmul.f32 %v4314_v35, %v1761_v41 }
 0x800   : > { %v1766_v46 = vadd.f32 1.4214138, %v1764_v42 }
 0x801   : > { %v1765_v47 = vadd.f32 1.4214138, %v1763_v45 }
 0x802   : > { %v1768_v48 = vmul.f32 %v4312_v33, %v1766_v46 }
 0x803   : > { %v1767_v49 = vmul.f32 %v4314_v35, %v1765_v47 }
 0x804   : > { %v1770_v50 = vadd.f32 -0.28449672, %v1768_v48  ;;  %v3147_v48 = vld [vmem:[%s5222_s8 + $0x1] ss:$0 sm:$0xff] }
 0x805   : > { %v1769_v51 = vadd.f32 -0.28449672, %v1767_v49 }
 0x806   : > { %v1772_v52 = vmul.f32 %v4312_v33, %v1770_v50 }
 0x807   : > { %v1771_v53 = vmul.f32 %v4314_v35, %v1769_v51 }
 0x808   : > { %v1774_v54 = vadd.f32 0.2548296, %v1772_v52 }
 0x809   : > { %v1773_v44 = vadd.f32 0.2548296, %v1771_v53 }
 0x80a   : > { %v1776_v55 = vmul.f32 %v4312_v33, %v1774_v54  ;;  %v3160_v54 = vld [vmem:[%s5224_s10 + $0x40] sm:$0xff] }
 0x80b   : > { %v1775_v57 = vmul.f32 %v4314_v35, %v1773_v44  ;;  %v3161_v44 = vld [vmem:[%s5224_s10 + $0x48] sm:$0xff] }
 0x80c   : > { %v1786_v61 = vmul.f32 %v4316_v56, %v1776_v55  ;;  %v4118_v55 = vpack.c.bf16 %v3161_v44, %v3160_v54  ;;  %v3162_v56 = vld [vmem:[%s5224_s10 + $0x50] sm:$0xff]  ;;  %v3198_v54 = vld [vmem:[%s5227_s13 + $0xa0] sm:$0xff]  ;;  %v3199_v44 = vld [vmem:[%s5227_s13 + $0xa8] sm:$0xff] }
 0x80d   : > { %v1785_v3 = vmul.f32 %v4318_v58, %v1775_v57  ;;  %v3163_v57 = vld [vmem:[%s5224_s10 + $0x58] sm:$0xff] }
 0x80e   : > { %v1788_v4 = vsub.f32 1.0, %v1786_v61  ;;  %v4122_v58 = vpack.c.bf16 %v3163_v57, %v3162_v56  ;;  %v3164_v61 = vld [vmem:[%s5224_s10 + $0x60] sm:$0xff]  ;;  %v3200_v56 = vld [vmem:[%s5227_s13 + $0xb0] sm:$0xff]  ;;  %v3201_v57 = vld [vmem:[%s5227_s13 + $0xb8] sm:$0xff] }
 0x80f   : > { %v1787_v10 = vsub.f32 1.0, %v1785_v3  ;;  %v3165_v3 = vld [vmem:[%s5224_s10 + $0x68] sm:$0xff] }
 0x810   : > { %v1790_v11 = vmul.f32 %v1788_v4, %v1748_v7  ;;  %v3167_v4 = vld [vmem:[%s5224_s10 + $0x78] sm:$0xff] }
 0x811   : > { %v1789_v13 = vmul.f32 %v1787_v10, %v1747_v12  ;;  %v3153_v10 = vld [vmem:[%s5223_s9 + $0x48] sm:$0xff]  ;;  %v3174_v12 = vld [vmem:[%s5226_s12 + $0x80] sm:$0xff] }
 0x812   : > { %v1792_v60 = vadd.f32 1.0, %v1790_v11 }
 0x813   : > { %v1791_v59 = vadd.f32 1.0, %v1789_v13  ;;  %v3175_v13 = vld [vmem:[%s5226_s12 + $0x88] sm:$0xff] }
 0x814   : > { %v1794_v16 = vmul.f32 %v1792_v60, %v1742_v31  ;;  %v4150_v60 = vpack.c.bf16 %v3175_v13, %v3174_v12  ;;  %v3188_v12 = vld [vmem:[%s5226_s12 + $0xf0] sm:$0xff]  ;;  %v3189_v13 = vld [vmem:[%s5226_s12 + $0xf8] sm:$0xff] }
 0x815   : > { %v1793_v15 = vmul.f32 %v1791_v59, %v1741_v14  ;;  %v3176_v14 = vld [vmem:[%s5226_s12 + $0x90] sm:$0xff]  ;;  %v3177_v59 = vld [vmem:[%s5226_s12 + $0x98] sm:$0xff] }
 0x816   : > { %v4154_v31 = vpack.c.bf16 %v3177_v59, %v3176_v14  ;;  %4151 = vmatprep.subr.bf16.mxu1 %v4150_v60  ;;  %v4178_v14 = vpack.c.bf16 %v3189_v13, %v3188_v12  ;;  %v3209_v59 = vld [vmem:[%s5227_s13 + $0xf8] sm:$0xff] }
 0x817   : > { %3706 = vmatprep.mubr.f32.mxu1 %v1793_v15  ;;  %v3178_v15 = vld [vmem:[%s5226_s12 + $0xa0] sm:$0xff]  ;;  %v3225_v12 = vld [vmem:[%s5232_s18 + $0x58] sm:$0xff] }
 0x818   : > { %3707 = vmatmul.mubr.f32.vlgmr.msra.gmra.mrb[10].mxu1 %v1794_v16  ;;  %v3179_v16 = vld [vmem:[%s5226_s12 + $0xa8] sm:$0xff] }
 0x819   : > { %4153 = vmatpush3.bf16.msra.mxu1 %v4150_v60  ;;  %v3208_v60 = vld [vmem:[%s5227_s13 + $0xf0] sm:$0xff] }
 0x81a   : > { %4155 = vmatprep.subr.bf16.mxu1 %v4154_v31 }
 0x81d   : > { %4157 = vmatpush3.bf16.msra.mxu1 %v4154_v31  ;;  %v4210_v31 = vpack.c.bf16 %v3209_v59, %v3208_v60  ;;  %v3226_v60 = vld [vmem:[%s5232_s18 + $0x60] sm:$0xff]  ;;  %v3228_v59 = vld [vmem:[%s5232_s18 + $0x70] sm:$0xff] }
 0x8eb   : > { %v3708_v18 = vpop.f32.mrb[10].mxu1 }
 0x8ec   : > { %v1890_v20 = vadd.f32 %v3708_v18, %v3143_v30  ;;  %v1884_v21 = vpop.f32.mrb[11].mxu1  ;;  %v3180_v18 = vld [vmem:[%s5226_s12 + $0xb0] sm:$0xff] }
 0x8ed   : > { %v1885_v22 = vadd.f32 %v3143_v30, %v1884_v21  ;;  %v4158_v30 = vpack.c.bf16 %v3179_v16, %v3178_v15  ;;  %v3173_v15 = vld [vmem:[%s5225_s11 + $0x1] ss:$0 sm:$0xff] }
 0x8ee   : > { %v4878_v23 = vadd.f32 %v1890_v20, %v4774_v8  ;;  %v3181_v20 = vld [vmem:[%s5226_s12 + $0xb8] sm:$0xff] }
 0x8ef   : > { %v4881_v24 = vadd.f32 %v1885_v22, %v4777_v9  ;;  %4159 = vmatprep.subr.bf16.mxu1 %v4158_v30  ;;  %v4162_v21 = vpack.c.bf16 %v3181_v20, %v3180_v18  ;;  %v3182_v22 = vld [vmem:[%s5226_s12 + $0xc0] sm:$0xff] }
 0x8f0   : > { %v1902_v17 = vsel %vm819_vm0, %v4878_v23, 0.0  ;;  %4161 = vmatpush3.bf16.msra.mxu1 %v4158_v30 }
 0x8f1   : > { %1903 = vadd.xlane.f32.xlu1 %v1902_v17  ;;  %v1899_v19 = vsel %vm819_vm0, %v4881_v24, 0.0  ;;  %4163 = vmatprep.subr.bf16.mxu1 %v4162_v21  ;;  %v3183_v17 = vld [vmem:[%s5226_s12 + $0xc8] sm:$0xff] }
 0x8f2   : > { %1900 = vadd.xlane.f32.xlu0 %v1899_v19  ;;  %v4166_v19 = vpack.c.bf16 %v3183_v17, %v3182_v22  ;;  %v3191_v17 = vld [vmem:[%s5228_s14 + $0x1] ss:$0 sm:$0xff] }
 0x8f4   : > { %4165 = vmatpush3.bf16.msra.mxu1 %v4162_v21 }
 0x8f5   : > { %4167 = vmatprep.subr.bf16.mxu1 %v4166_v19 }
 0x8f8   : > { %4169 = vmatpush3.bf16.msra.mxu1 %v4166_v19  ;;  %v3211_v19 = vld [vmem:[%s5229_s15 + $0x1] ss:$0 sm:$0xff] }
 0x97e   : > { %v1904_v25 = vpop.xlane.xlu1 %1903 }
 0x97f   : > { %v1906_v26 = vmul.f32 0.015625, %v1904_v25  ;;  %v1901_v27 = vpop.xlane.xlu0 %1900  ;;  %v3184_v25 = vld [vmem:[%s5226_s12 + $0xd0] sm:$0xff] }
 0x980   : > { %v1905_v29 = vmul.f32 0.015625, %v1901_v27 }
 0x981   : > { %v1908_v32 = vsub.f32 %v4878_v23, %v1906_v26  ;;  %v3185_v26 = vld [vmem:[%s5226_s12 + $0xd8] sm:$0xff] }
 0x982   : > { %v1907_v8 = vsub.f32 %v4881_v24, %v1905_v29  ;;  %v4170_v27 = vpack.c.bf16 %v3185_v26, %v3184_v25  ;;  %v3186_v29 = vld [vmem:[%s5226_s12 + $0xe0] sm:$0xff] }
 0x983   : > { %v1910_v33 = vmul.f32 %v1908_v32, %v1908_v32 }
 0x984   : > { %v1909_v34 = vmul.f32 %v1907_v8, %v1907_v8  ;;  %4171 = vmatprep.subr.bf16.mxu1 %v4170_v27 }
 0x985   : > { %v1914_v9 = vsel %vm819_vm0, %v1910_v33, 0.0  ;;  %4173 = vmatpush3.bf16.msra.mxu1 %v4170_v27 }
 0x986   : > { %1915 = vadd.xlane.f32.xlu1 %v1914_v9  ;;  %v1911_v35 = vsel %vm819_vm0, %v1909_v34, 0.0  ;;  %v3154_v9 = vld [vmem:[%s5223_s9 + $0x50] sm:$0xff] }
 0x987   : > { %1912 = vadd.xlane.f32.xlu0 %v1911_v35  ;;  %v3155_v35 = vld [vmem:[%s5223_s9 + $0x58] sm:$0xff] }
 0xa13   : > { %v1916_v36 = vpop.xlane.xlu1 %1915 }
 0xa14   : > { %v1918_v37 = vmul.f32 0.015625, %v1916_v36  ;;  %v1913_v38 = vpop.xlane.xlu0 %1912 }
 0xa15   : > { %v1917_v39 = vmul.f32 0.015625, %v1913_v38  ;;  %v4138_v38 = vpack.c.bf16 %v3155_v35, %v3154_v9 }
 0xa16   : > { %v1920_v40 = vadd.f32 1e-06, %v1918_v37 }
 0xa17   : > { %v1919_v41 = vadd.f32 1e-06, %v1917_v39  ;;  %v3156_v39 = vld [vmem:[%s5223_s9 + $0x60] sm:$0xff] }
 0xa18   : > { %4319 = vrsqrt.f32 %v1920_v40  ;;  %v3157_v40 = vld [vmem:[%s5223_s9 + $0x68] sm:$0xff] }
 0xa19   : > { %4321 = vrsqrt.f32 %v1919_v41  ;;  %v4142_v41 = vpack.c.bf16 %v3157_v40, %v3156_v39 }
 0xa22   : > { %v4320_v42 = vpop.eup %4319 }
 0xa23   : > { %v4322_v45 = vpop.eup %4321  ;;  %v1924_v46 = vmul.f32 %v4320_v42, %v1908_v32  ;;  %v3187_v32 = vld [vmem:[%s5226_s12 + $0xe8] sm:$0xff]  ;;  %v3158_v42 = vld [vmem:[%s5223_s9 + $0x70] sm:$0xff] }
 0xa24   : > { %v1923_v47 = vmul.f32 %v4322_v45, %v1907_v8  ;;  %v4174_v8 = vpack.c.bf16 %v3187_v32, %v3186_v29 }
 0xa25   : > { %v1932_v49 = vmul.f32 %v3146_v43, %v1924_v46  ;;  %v3194_v46 = vld [vmem:[%s5227_s13 + $0x80] sm:$0xff] }
 0xa26   : > { %v1931_v50 = vmul.f32 %v3146_v43, %v1923_v47  ;;  %4175 = vmatprep.subr.bf16.mxu1 %v4174_v8  ;;  %v3159_v43 = vld [vmem:[%s5223_s9 + $0x78] sm:$0xff]  ;;  %v3195_v47 = vld [vmem:[%s5227_s13 + $0x88] sm:$0xff] }
 0xa27   : > { %v4897_v51 = vadd.f32 %v3147_v48, %v1932_v49  ;;  %4177 = vmatpush3.bf16.msra.mxu1 %v4174_v8  ;;  %v4146_v45 = vpack.c.bf16 %v3159_v43, %v3158_v42  ;;  %v3196_v49 = vld [vmem:[%s5227_s13 + $0x90] sm:$0xff] }
 0xa28   : > { %v4899_v52 = vadd.f32 %v3147_v48, %v1931_v50  ;;  %v4182_v48 = vpack.c.bf16 %v3195_v47, %v3194_v46  ;;  %v3197_v50 = vld [vmem:[%s5227_s13 + $0x98] sm:$0xff]  ;;  %4179 = vmatprep.subr.bf16.mxu1 %v4178_v14 }
 0xa2a   : > { %v4110_v53 = vpack.c.bf16 %v4897_v51, %v4899_v52 }
 0xa2b   : > { %4181 = vmatpush3.bf16.msra.mxu1 %v4178_v14  ;;  %v3227_v14 = vld [vmem:[%s5232_s18 + $0x68] sm:$0xff] }
 0xa2c   : > { %4111 = vmatprep.subr.bf16.mxu0 %v4110_v53 }
 0xa2d   : > { %4113 = vmatpush3.bf16.msra.mxu0 %v4110_v53 }
 0xa2e   : > { %4115 = vmatprep.subr.bf16.mxu0 %v4110_v53 }
 0xa30   : > { %3714 = vmatmul.mubr.msk.f32.vlgmr.msra.gmra.mrb[6].mxu0 %vm863_vm1, %v4574_v0  ;;  %v4126_v0 = vpack.c.bf16 %v3165_v3, %v3164_v61  ;;  %v3202_v61 = vld [vmem:[%s5227_s13 + $0xc0] sm:$0xff]  ;;  %v3203_v3 = vld [vmem:[%s5227_s13 + $0xc8] sm:$0xff] }
 0xa31   : > { %4117 = vmatpush3.bf16.msra.mxu0 %v4110_v53  ;;  %3720 = vmatprep.mubr.msk.f32.mxu0 %vm863_vm1, %v4579_v1  ;;  %v3166_v1 = vld [vmem:[%s5224_s10 + $0x70] sm:$0xff]  ;;  %v4186_v53 = vpack.c.bf16 %v3197_v50, %v3196_v49 }
 0xa32   : > { %4119 = vmatprep.subr.bf16.mxu0 %v4118_v55  ;;  %v4130_v7 = vpack.c.bf16 %v3167_v4, %v3166_v1  ;;  %v3204_v1 = vld [vmem:[%s5227_s13 + $0xd0] sm:$0xff]  ;;  %v3205_v4 = vld [vmem:[%s5227_s13 + $0xd8] sm:$0xff] }
 0xa34   : > { %3721 = vmatmul.mubr.msk.f32.vlgmr.msra.gmra.mrb[8].mxu0 %vm863_vm1, %v4594_v5  ;;  %v3152_v5 = vld [vmem:[%s5223_s9 + $0x40] sm:$0xff] }
 0xa35   : > { %4121 = vmatpush3.bf16.msra.mxu0 %v4118_v55  ;;  %v4134_v11 = vpack.c.bf16 %v3153_v10, %v3152_v5  ;;  %v4190_v55 = vpack.c.bf16 %v3199_v44, %v3198_v54  ;;  %v3206_v5 = vld [vmem:[%s5227_s13 + $0xe0] sm:$0xff]  ;;  %v3207_v10 = vld [vmem:[%s5227_s13 + $0xe8] sm:$0xff] }
 0xa36   : > { %4123 = vmatprep.subr.bf16.mxu0 %v4122_v58 }
 0xa39   : > { %4125 = vmatpush3.bf16.msra.mxu0 %v4122_v58  ;;  %v4194_v58 = vpack.c.bf16 %v3201_v57, %v3200_v56 }
 0xa3a   : > { %4127 = vmatprep.subr.bf16.mxu0 %v4126_v0 }
 0xa3d   : > { %4129 = vmatpush3.bf16.msra.mxu0 %v4126_v0  ;;  %v4198_v0 = vpack.c.bf16 %v3203_v3, %v3202_v61 }
 0xa3e   : > { %4131 = vmatprep.subr.bf16.mxu0 %v4130_v7 }
 0xa41   : > { %4133 = vmatpush3.bf16.msra.mxu0 %v4130_v7  ;;  %v4202_v7 = vpack.c.bf16 %v3205_v4, %v3204_v1 }
 0xa42   : > { %4135 = vmatprep.subr.bf16.mxu0 %v4134_v11 }
 0xb03   : > { %v3715_v33 = vpop.f32.mrb[6].mxu0 }
 0xb04   : > { %v2007_v34 = vpop.f32.mrb[7].mxu0 }
 0xb07   : > { %v3722_v36 = vpop.f32.mrb[8].mxu0 }
 0xb08   : > { %v2082_v37 = vpop.f32.mrb[9].mxu0 }
 0xb09   : > { %3739 = vmatprep.mubr.msk.f32.mxu0 %vm819_vm0, %v2082_v37 }
 0xb0a   : > { %3740 = vmatmul.mubr.msk.f32.vlgmr.msra.gmra.mrb[10].mxu0 %vm819_vm0, %v3722_v36 }
 0xb0b   : > { %4137 = vmatpush3.bf16.msra.mxu0 %v4134_v11  ;;  %3758 = vmatprep.mubr.msk.f32.mxu0 %vm819_vm0, %v2007_v34  ;;  %v4206_v11 = vpack.c.bf16 %v3207_v10, %v3206_v5  ;;  %v3223_v5 = vld [vmem:[%s5232_s18 + $0x48] sm:$0xff] }
 0xb0c   : > { %4139 = vmatprep.subr.bf16.mxu0 %v4138_v38 }
 0xb0f   : > { %4141 = vmatpush3.bf16.msra.mxu0 %v4138_v38 }
 0xb10   : > { %4143 = vmatprep.subr.bf16.mxu0 %v4142_v41 }
 0xb13   : > { %4145 = vmatpush3.bf16.msra.mxu0 %v4142_v41 }
 0xb14   : > { %4147 = vmatprep.subr.bf16.mxu0 %v4146_v45 }
 0xb17   : > { %4149 = vmatpush3.bf16.msra.mxu0 %v4146_v45 }
 0xb18   : > { %4183 = vmatprep.subr.bf16.mxu0 %v4182_v48 }
 0xb1a   : > { %3759 = vmatmul.mubr.msk.f32.vlgmr.msra.gmra.mrb[10].mxu0 %vm819_vm0, %v3715_v33 }
 0xb1b   : > { %4185 = vmatpush3.bf16.msra.mxu0 %v4182_v48 }
 0xb1c   : > { %4187 = vmatprep.subr.bf16.mxu0 %v4186_v53 }
 0xb1f   : > { %4189 = vmatpush3.bf16.msra.mxu0 %v4186_v53 }
 0xb20   : > { %4191 = vmatprep.subr.bf16.mxu0 %v4190_v55 }
 0xb23   : > { %4193 = vmatpush3.bf16.msra.mxu0 %v4190_v55 }
 0xb24   : > { %4195 = vmatprep.subr.bf16.mxu0 %v4194_v58 }
 0xb27   : > { %4197 = vmatpush3.bf16.msra.mxu0 %v4194_v58 }
 0xb28   : > { %4199 = vmatprep.subr.bf16.mxu0 %v4198_v0 }
 0xb2b   : > { %4201 = vmatpush3.bf16.msra.mxu0 %v4198_v0 }
 0xb2c   : > { %4203 = vmatprep.subr.bf16.mxu0 %v4202_v7 }
 0xb2f   : > { %4205 = vmatpush3.bf16.msra.mxu0 %v4202_v7  ;;  %v3222_v7 = vld [vmem:[%s5232_s18 + $0x40] sm:$0xff] }
 0xb30   : > { %4207 = vmatprep.subr.bf16.mxu0 %v4206_v11  ;;  %v4222_v10 = vpack.c.bf16 %v3223_v5, %v3222_v7  ;;  %v3231_v7 = vld [vmem:[%s5233_s19 + $0x1] ss:$0 sm:$0xff] }
 0xb33   : > { %4209 = vmatpush3.bf16.msra.mxu0 %v4206_v11  ;;  %v3224_v11 = vld [vmem:[%s5232_s18 + $0x50] sm:$0xff] }
 0xb34   : > { %4211 = vmatprep.subr.bf16.mxu0 %v4210_v31  ;;  %v4226_v13 = vpack.c.bf16 %v3225_v12, %v3224_v11 }
 0xb37   : > { %4213 = vmatpush3.bf16.msra.mxu0 %v4210_v31  ;;  %v4230_v31 = vpack.c.bf16 %v3227_v14, %v3226_v60 }
 0xbed   : > { %v3760_v16 = vpop.f32.mrb[10].mxu0 }
 0xbee   : > { %v2280_v30 = vadd.f32 %v3760_v16, %v3173_v15  ;;  %v2262_v18 = vpop.f32.mrb[11].mxu0 }
 0xbef   : > { %v2279_v20 = vadd.f32 %v3173_v15, %v2262_v18  ;;  %v3229_v15 = vld [vmem:[%s5232_s18 + $0x78] sm:$0xff] }
 0xbf0   : > { %v2282_v22 = vmax.f32 %v2280_v30, 0.0  ;;  %v4234_v16 = vpack.c.bf16 %v3229_v15, %v3228_v59 }
 0xbf1   : > { %v2281_v21 = vmax.f32 %v2279_v20, 0.0 }
 0xbf3   : > { %3793 = vmatprep.mubr.f32.mxu1 %v2281_v21  ;;  %3828 = vmatprep.mubr.f32.mxu0 %v2281_v21 }
 0xbf4   : > { %3794 = vmatmul.mubr.f32.vlgmr.msra.gmra.mrb[12].mxu1 %v2282_v22  ;;  %3829 = vmatmul.mubr.f32.vlgmr.msra.gmra.mrb[12].mxu0 %v2282_v22 }
 0xbf5   : > { %3835 = vmatprep.mubr.msk.f32.mxu1 %vm863_vm1, %v4740_v28 }
 0xcc7   : > { %v3795_v25 = vpop.f32.mrb[12].mxu1  ;;  %v3830_v26 = vpop.f32.mrb[12].mxu0 }
 0xcc8   : > { %v2380_v27 = vadd.f32 %v3795_v25, %v3191_v17  ;;  %v2492_v29 = vadd.f32 %v3830_v26, %v3211_v19  ;;  %v2374_v32 = vpop.f32.mrb[13].mxu1  ;;  %v2486_v8 = vpop.f32.mrb[13].mxu0  ;;  %v3220_v25 = vld [vmem:[%s5230_s16 + $0x1] ss:$0 sm:$0xff] }
 0xcc9   : > { %v2375_v33 = vadd.f32 %v3191_v17, %v2374_v32  ;;  %v2487_v34 = vadd.f32 %v3211_v19, %v2486_v8  ;;  %v3221_v32 = vld [vmem:[%s5231_s17 + $0x1] ss:$0 sm:$0xff] }
 0xcca   : > { %v3193_v9 = vadd.f32 -0.01, %v2380_v27  ;;  %v2390_v35 = vadd.f32 0.01, %v2380_v27  ;;  %v3213_v36 = vadd.f32 -0.01, %v2492_v29 }
 0xccb   : > { %v2502_v28 = vadd.f32 0.01, %v2492_v29  ;;  %v3192_v37 = vadd.f32 -0.01, %v2375_v33  ;;  %v2389_v38 = vadd.f32 0.01, %v2375_v33 }
 0xccc   : > { %v3212_v39 = vadd.f32 -0.01, %v2487_v34  ;;  %v2501_v40 = vadd.f32 0.01, %v2487_v34  ;;  %vm2495_vm12 = vcmp.gt.f32.partialorder %v2487_v34, 0.01 }
 0xccd   : > { %vm2499_vm13 = vcmp.lt.f32.partialorder %v2487_v34, -0.01  ;;  %vm2500_vm14 = vcmp.lt.f32.partialorder %v2492_v29, -0.01  ;;  %vm2496_vm15 = vcmp.gt.f32.partialorder %v2492_v29, 0.01 }
 0xcce   : > { %v2503_v41 = vsel %vm2499_vm13, %v2501_v40, 0.0  ;;  %v2504_v42 = vsel %vm2500_vm14, %v2502_v28, 0.0  ;;  %vm2383_vm2 = vcmp.gt.f32.partialorder %v2375_v33, 0.01  ;;  %vm2387_vm3 = vcmp.lt.f32.partialorder %v2375_v33, -0.01 }
 0xccf   : > { %v2505_v43 = vsel %vm2495_vm12, %v3212_v39, %v2503_v41  ;;  %v2506_v45 = vsel %vm2496_vm15, %v3213_v36, %v2504_v42  ;;  %vm2388_vm4 = vcmp.lt.f32.partialorder %v2380_v27, -0.01  ;;  %vm2384_vm5 = vcmp.gt.f32.partialorder %v2380_v27, 0.01  ;;  %v3235_v36 = vld [vmem:[%s5234_s20 + $0x88] sm:$0xff]  ;;  %v3238_v40 = vld [vmem:[%s5234_s20 + $0xa0] sm:$0xff] }
 0xcd0   : > { %v4214_v46 = vpack.c.bf16 %v2506_v45, %v2505_v43  ;;  %v2391_v47 = vsel %vm2387_vm3, %v2389_v38, 0.0  ;;  %v2392_v48 = vsel %vm2388_vm4, %v2390_v35, 0.0  ;;  %v3234_v35 = vld [vmem:[%s5234_s20 + $0x80] sm:$0xff]  ;;  %v3237_v38 = vld [vmem:[%s5234_s20 + $0x98] sm:$0xff]  ;;  %v3239_v41 = vld [vmem:[%s5234_s20 + $0xa8] sm:$0xff] }
 0xcd1   : > { %v2393_v49 = vsel %vm2383_vm2, %v3192_v37, %v2391_v47  ;;  %v2394_v50 = vsel %vm2384_vm5, %v3193_v9, %v2392_v48  ;;  %v4238_v28 = vpack.c.bf16 %v3235_v36, %v3234_v35  ;;  %v3236_v37 = vld [vmem:[%s5234_s20 + $0x90] sm:$0xff]  ;;  %v4246_v42 = vpack.c.bf16 %v3239_v41, %v3238_v40  ;;  %v3241_v45 = vld [vmem:[%s5234_s20 + $0xb8] sm:$0xff]  ;;  %v3242_v47 = vld [vmem:[%s5234_s20 + $0xc0] sm:$0xff] }
 0xcd2   : > { %4215 = vmatprep.subr.bf16.mxu1 %v4214_v46  ;;  %v4218_v53 = vpack.c.bf16 %v2394_v50, %v2393_v49  ;;  %v4242_v39 = vpack.c.bf16 %v3237_v38, %v3236_v37  ;;  %v3240_v43 = vld [vmem:[%s5234_s20 + $0xb0] sm:$0xff]  ;;  %v3243_v48 = vld [vmem:[%s5234_s20 + $0xc8] sm:$0xff] }
 0xcd3   : > { %4217 = vmatpush3.bf16.msra.mxu1 %v4214_v46  ;;  %4239 = vmatprep.subr.bf16.mxu0 %v4238_v28  ;;  %v4250_v46 = vpack.c.bf16 %v3241_v45, %v3240_v43  ;;  %v4254_v49 = vpack.c.bf16 %v3243_v48, %v3242_v47  ;;  %v3244_v50 = vld [vmem:[%s5234_s20 + $0xd0] sm:$0xff] }
 0xcd4   : > { %4219 = vmatprep.subr.bf16.mxu1 %v4218_v53  ;;  %4241 = vmatpush3.bf16.msra.mxu0 %v4238_v28 }
 0xcd5   : > { %4243 = vmatprep.subr.bf16.mxu0 %v4242_v39 }
 0xcd6   : > { %3836 = vmatmul.mubr.msk.f32.vlgmr.msra.gmra.mrb[14].mxu1 %vm863_vm1, %v4753_v62 }
 0xcd7   : > { %4221 = vmatpush3.bf16.msra.mxu1 %v4218_v53  ;;  %3842 = vmatprep.mubr.msk.f32.mxu1 %vm863_vm1, %v4758_v63  ;;  %v3245_v53 = vld [vmem:[%s5234_s20 + $0xd8] sm:$0xff] }
 0xcd8   : > { %4223 = vmatprep.subr.bf16.mxu1 %v4222_v10  ;;  %4245 = vmatpush3.bf16.msra.mxu0 %v4242_v39 }
 0xcd9   : > { %4247 = vmatprep.subr.bf16.mxu0 %v4246_v42 }
 0xcdc   : > { %4249 = vmatpush3.bf16.msra.mxu0 %v4246_v42 }
 0xcdd   : > { %4251 = vmatprep.subr.bf16.mxu0 %v4250_v46 }
 0xcde   : > { %3843 = vmatmul.mubr.msk.f32.vlgmr.msra.gmra.mrb[14].mxu1 %vm863_vm1, %v4767_v2 }
 0xcdf   : > { %4225 = vmatpush3.bf16.msra.mxu1 %v4222_v10 }
 0xce0   : > { %4227 = vmatprep.subr.bf16.mxu1 %v4226_v13  ;;  %4253 = vmatpush3.bf16.msra.mxu0 %v4250_v46 }
 0xce1   : > { %4255 = vmatprep.subr.bf16.mxu0 %v4254_v49 }
 0xce3   : > { %4229 = vmatpush3.bf16.msra.mxu1 %v4226_v13 }
 0xce4   : > { %4231 = vmatprep.subr.bf16.mxu1 %v4230_v31  ;;  %4257 = vmatpush3.bf16.msra.mxu0 %v4254_v49 }
 0xce7   : > { %4233 = vmatpush3.bf16.msra.mxu1 %v4230_v31 }
 0xce8   : > { %4235 = vmatprep.subr.bf16.mxu1 %v4234_v16 }
 0xceb   : > { %4237 = vmatpush3.bf16.msra.mxu1 %v4234_v16 }
 0xdb1   : > { %v3844_v54 = vpop.f32.mrb[14].mxu1 }
 0xdb2   : > { %v2658_v44 = vadd.f32 %v3844_v54, %v4897_v51  ;;  %v2648_v55 = vpop.f32.mrb[15].mxu1  ;;  %v4258_v54 = vpack.c.bf16 %v3245_v53, %v3244_v50 }
 0xdb3   : > { %v2657_v56 = vadd.f32 %v2648_v55, %v4899_v52  ;;  %v3247_v55 = vld [vmem:[%s5234_s20 + $0xe8] sm:$0xff] }
 0xdb4   : > { %v5077_v57 = vadd.f32 %v2658_v44, %v4878_v23  ;;  %4259 = vmatprep.subr.bf16.mxu0 %v4258_v54  ;;  %v3246_v44 = vld [vmem:[%s5234_s20 + $0xe0] sm:$0xff] }
 0xdb5   : > { %v5080_v58 = vadd.f32 %v2657_v56, %v4881_v24  ;;  %4261 = vmatpush3.bf16.msra.mxu0 %v4258_v54  ;;  %v4262_v56 = vpack.c.bf16 %v3247_v55, %v3246_v44 }
 0xdb6   : > { %v2668_v62 = vsel %vm819_vm0, %v5077_v57, 0.0 }
 0xdb7   : > { %2669 = vadd.xlane.f32.xlu1 %v2668_v62  ;;  %v2665_v63 = vsel %vm819_vm0, %v5080_v58, 0.0  ;;  %4263 = vmatprep.subr.bf16.mxu0 %v4262_v56  ;;  %v3248_v62 = vld [vmem:[%s5234_s20 + $0xf0] sm:$0xff] }
 0xdb8   : > { %2666 = vadd.xlane.f32.xlu0 %v2665_v63  ;;  %v3249_v63 = vld [vmem:[%s5234_s20 + $0xf8] sm:$0xff] }
 0xdb9   : > { %4265 = vmatpush3.bf16.msra.mxu0 %v4262_v56 }
 0xe44   : > { %v2670_v2 = vpop.xlane.xlu1 %2669 }
 0xe45   : > { %v2672_v61 = vmul.f32 0.015625, %v2670_v2  ;;  %v2667_v51 = vpop.xlane.xlu0 %2666  ;;  %v4266_v2 = vpack.c.bf16 %v3249_v63, %v3248_v62 }
 0xe46   : > { %v2671_v3 = vmul.f32 0.015625, %v2667_v51  ;;  %v2962_v51 = vld [vmem:[%s5236_s22 + $0x8] sm:$0xff] }
 0xe47   : > { %v2674_v52 = vsub.f32 %v5077_v57, %v2672_v61  ;;  %4267 = vmatprep.subr.bf16.mxu0 %v4266_v2  ;;  %v2961_v61 = vld [vmem:[%s5236_s22] sm:$0xff] }
 0xe48   : > { %v2673_v23 = vsub.f32 %v5080_v58, %v2671_v3  ;;  %v2963_v3 = vld [vmem:[%s5236_s22 + $0x10] sm:$0xff]  ;;  %4269 = vmatpush3.bf16.msra.mxu0 %v4266_v2 }
 0xe49   : > { %v2676_v0 = vmul.f32 %v2674_v52, %v2674_v52 }
 0xe4a   : > { %v2675_v1 = vmul.f32 %v2673_v23, %v2673_v23 }
 0xe4b   : > { %v2680_v24 = vsel %vm819_vm0, %v2676_v0, 0.0 }
 0xe4c   : > { %2681 = vadd.xlane.f32.xlu1 %v2680_v24  ;;  %v2677_v4 = vsel %vm819_vm0, %v2675_v1, 0.0  ;;  %v2965_v1 = vld [vmem:[%s5236_s22 + $0x20] sm:$0xff]  ;;  %v2966_v24 = vld [vmem:[%s5236_s22 + $0x28] sm:$0xff] }
 0xe4d   : > { %2678 = vadd.xlane.f32.xlu0 %v2677_v4  ;;  %v4278_v4 = vpack.c.bf16 %v2966_v24, %v2965_v1 }
 0xed9   : > { %v2682_v30 = vpop.xlane.xlu1 %2681 }
 0xeda   : > { %v2684_v18 = vmul.f32 0.015625, %v2682_v30  ;;  %v2679_v20 = vpop.xlane.xlu0 %2678 }
 0xedb   : > { %v2683_v21 = vmul.f32 0.015625, %v2679_v20 }
 0xedc   : > { %v2686_v22 = vadd.f32 1e-06, %v2684_v18 }
 0xedd   : > { %v2685_v17 = vadd.f32 1e-06, %v2683_v21 }
 0xede   : > { %4323 = vrsqrt.f32 %v2686_v22 }
 0xedf   : > { %4325 = vrsqrt.f32 %v2685_v17 }
 0xee8   : > { %v4324_v19 = vpop.eup %4323 }
 0xee9   : > { %v4326_v26 = vpop.eup %4325  ;;  %v2690_v27 = vmul.f32 %v4324_v19, %v2674_v52  ;;  %v4270_v52 = vpack.c.bf16 %v2962_v51, %v2961_v61 }
 0xeea   : > { %v2689_v29 = vmul.f32 %v4326_v26, %v2673_v23  ;;  %v2964_v23 = vld [vmem:[%s5236_s22 + $0x18] sm:$0xff] }
 0xeeb   : > { %v2698_v8 = vmul.f32 %v3220_v25, %v2690_v27  ;;  %v4274_v0 = vpack.c.bf16 %v2964_v23, %v2963_v3  ;;  %4271 = vmatprep.subr.bf16.mxu1 %v4270_v52  ;;  %v2968_v23 = vld [vmem:[%s5236_s22 + $0x38] sm:$0xff] }
 0xeec   : > { %v2697_v33 = vmul.f32 %v3220_v25, %v2689_v29 }
 0xeed   : > { %v2706_v9 = vadd.f32 %v3221_v32, %v2698_v8 }
 0xeee   : > { %v2705_v34 = vadd.f32 %v3221_v32, %v2697_v33 }
 0xef0   : > { %3861 = vmatprep.mubr.msk.f32.mxu1 %vm819_vm0, %v2705_v34 }
 0xef1   : > { %3862 = vmatmul.mubr.msk.f32.vlgmr.msra.gmra.mrb[16].mxu1 %vm819_vm0, %v2706_v9 }
 0xef2   : > { %4273 = vmatpush3.bf16.msra.mxu1 %v4270_v52  ;;  %v2967_v52 = vld [vmem:[%s5236_s22 + $0x30] sm:$0xff] }
 0xef3   : > { %4275 = vmatprep.subr.bf16.mxu1 %v4274_v0 }
 0xef6   : > { %4277 = vmatpush3.bf16.msra.mxu1 %v4274_v0  ;;  %v4282_v0 = vpack.c.bf16 %v2968_v23, %v2967_v52 }
 0xef7   : > { %4279 = vmatprep.subr.bf16.mxu1 %v4278_v4 }
 0xefa   : > { %4281 = vmatpush3.bf16.msra.mxu1 %v4278_v4 }
 0xefb   : > { %4283 = vmatprep.subr.bf16.mxu1 %v4282_v0 }
 0xefe   : > { %4285 = vmatpush3.bf16.msra.mxu1 %v4282_v0 }
 0xfc4   : > { %v3863_v5 = vpop.f32.mrb[16].mxu1 }
 0xfc5   : > { %v2802_v10 = vadd.f32 %v3863_v5, %v3231_v7  ;;  %v2796_v11 = vpop.f32.mrb[17].mxu1 }
 0xfc6   : > { %v2797_v12 = vadd.f32 %v3231_v7, %v2796_v11 }
 0xfc7   : > { %v2808_v13 = vmul.f32 0.70710677, %v2802_v10  ;;  %v2806_v61 = vmul.f32 0.5, %v2802_v10 }
 0xfc8   : > { %v2807_v60 = vmul.f32 0.70710677, %v2797_v12  ;;  %v2805_v63 = vmul.f32 0.5, %v2797_v12 }
 0xfc9   : > { %v2814_v14 = vand.u32 2147483647, %v2808_v13  ;;  %vm2810_vm1 = vcmp.ge.f32.partialorder %v2808_v13, 0.0 }
 0xfca   : > { %v2813_v59 = vand.u32 2147483647, %v2807_v60  ;;  %vm2809_vm6 = vcmp.ge.f32.partialorder %v2807_v60, 0.0  ;;  %v2812_v53 = vsel %vm2810_vm1, 1.0, %v4343_v6 }
 0xfcb   : > { %v2816_v31 = vmul.f32 0.3275911, %v2814_v14  ;;  %v2842_v18 = vsub.f32 0.0, %v2814_v14  ;;  %v2811_v55 = vsel %vm2809_vm6, 1.0, %v4343_v6  ;;  %v3251_v6 = vld [vmem:[%s5235_s21 + $0x1] ss:$0 sm:$0xff] }
 0xfcc   : > { %v2815_v15 = vmul.f32 0.3275911, %v2813_v59  ;;  %v2841_v20 = vsub.f32 0.0, %v2813_v59 }
 0xfcd   : > { %v2818_v16 = vadd.f32 1.0, %v2816_v31  ;;  %v2844_v22 = vmul.f32 %v2842_v18, %v2814_v14 }
 0xfce   : > { %v2817_v30 = vadd.f32 1.0, %v2815_v15  ;;  %v2843_v25 = vmul.f32 %v2841_v20, %v2813_v59 }
 0xfcf   : > { %4327 = vrcp.f32 %v2818_v16  ;;  %v2847_v29 = vmul.f32 1.442695, %v2844_v22 }
 0xfd0   : > { %4329 = vrcp.f32 %v2817_v30  ;;  %v2845_v33 = vmul.f32 1.442695, %v2843_v25 }
 0xfd1   : > { %4331 = vpow2.f32 %v2847_v29 }
 0xfd2   : > { %4333 = vpow2.f32 %v2845_v33 }
 0xfd9   : > { %v4328_v21 = vpop.eup %4327 }
 0xfda   : > { %v4330_v17 = vpop.eup %4329  ;;  %v2824_v19 = vmul.f32 1.0614054, %v4328_v21 }
 0xfdb   : > { %v2823_v26 = vmul.f32 1.0614054, %v4330_v17  ;;  %v4332_v45 = vpop.eup %4331 }
 0xfdc   : > { %v2826_v27 = vadd.f32 -1.4531521, %v2824_v19  ;;  %v4334_v47 = vpop.eup %4333 }
 0xfdd   : > { %v2825_v32 = vadd.f32 -1.4531521, %v2823_v26 }
 0xfde   : > { %v2828_v8 = vmul.f32 %v4328_v21, %v2826_v27 }
 0xfdf   : > { %v2827_v34 = vmul.f32 %v4330_v17, %v2825_v32 }
 0xfe0   : > { %v2830_v9 = vadd.f32 1.4214138, %v2828_v8 }
 0xfe1   : > { %v2829_v35 = vadd.f32 1.4214138, %v2827_v34 }
 0xfe2   : > { %v2832_v36 = vmul.f32 %v4328_v21, %v2830_v9 }
 0xfe3   : > { %v2831_v28 = vmul.f32 %v4330_v17, %v2829_v35 }
 0xfe4   : > { %v2834_v37 = vadd.f32 -0.28449672, %v2832_v36 }
 0xfe5   : > { %v2833_v38 = vadd.f32 -0.28449672, %v2831_v28 }
 0xfe6   : > { %v2836_v39 = vmul.f32 %v4328_v21, %v2834_v37 }
 0xfe7   : > { %v2835_v40 = vmul.f32 %v4330_v17, %v2833_v38 }
 0xfe8   : > { %v2838_v41 = vadd.f32 0.2548296, %v2836_v39 }
 0xfe9   : > { %v2837_v42 = vadd.f32 0.2548296, %v2835_v40 }
 0xfea   : > { %v2840_v43 = vmul.f32 %v4328_v21, %v2838_v41 }
 0xfeb   : > { %v2839_v46 = vmul.f32 %v4330_v17, %v2837_v42 }
 0xfec   : > { %v2850_v48 = vmul.f32 %v4332_v45, %v2840_v43 }
 0xfed   : > { %v2849_v49 = vmul.f32 %v4334_v47, %v2839_v46 }
 0xfee   : > { %v2852_v50 = vsub.f32 1.0, %v2850_v48 }
 0xfef   : > { %v2851_v54 = vsub.f32 1.0, %v2849_v49 }
 0xff0   : > { %v2854_v44 = vmul.f32 %v2852_v50, %v2812_v53 }
 0xff1   : > { %v2853_v56 = vmul.f32 %v2851_v54, %v2811_v55 }
 0xff2   : > { %v2856_v62 = vadd.f32 1.0, %v2854_v44 }
 0xff3   : > { %v2855_v2 = vadd.f32 1.0, %v2853_v56 }
 0xff4   : > { %v2858_v3 = vmul.f32 %v2856_v62, %v2806_v61 }
 0xff5   : > { %v2857_v51 = vmul.f32 %v2855_v2, %v2805_v63 }
 0xff7   : > { %3896 = vmatprep.mubr.f32.mxu0 %v2857_v51 }
 0xff8   : > { %3897 = vmatmul.mubr.f32.vlgmr.msra.gmra.mrb[14].mxu0 %v2858_v3 }
0x10cb   : > { %v3898_v1 = vpop.f32.mrb[14].mxu0 }
0x10cc   : > { %v2956_v24 = vadd.f32 %v3898_v1, %v3251_v6  ;;  %v2950_v4 = vpop.f32.mrb[15].mxu0 }
0x10cd   : > { %v2951_v7 = vadd.f32 %v3251_v6, %v2950_v4 }
0x10ce   : > { %v2960_v10 = vadd.f32 %v2956_v24, %v5077_v57 }
0x10cf   : > { %v2959_v5 = vadd.f32 %v2951_v7, %v5080_v58 }
0x10d1   : > { %3915 = vmatprep.mubr.msk.f32.mxu1 %vm819_vm0, %v2959_v5 }
0x10d2   : > { %3916 = vmatmul.mubr.msk.f32.vlgmr.msra.gmra.mrb[18].mxu1 %vm819_vm0, %v2960_v10 }
0x11a5   : > { %v3917_v11 = vpop.f32.mrb[18].mxu1 }
0x11a6   : > { %v3041_v12 = vpop.f32.mrb[19].mxu1  ;;  %3051 = vst [vmem:[%s712_s5 + $0x8] sm:$0xff] %v3917_v11 }
0x11a7   : > { %3050 = vst [vmem:[%s712_s5] sm:$0xff] %v3041_v12 }
0x11a8 PF: > { %s33_s4 = sadd.s32 1, %s4341_s4  }
0x11a9   : > { %p30_p4 = scmp.ge.s32.totalorder %s33_s4, 4  }
0x11ab   :  { %32 = sbr.rel (!%p30_p4) target bundleno = 9 (0x9), region = 157 }

</bundles_post_ra>
